<compile_context>
chip_gen: v7x
topology: tpu7x:2x2x1
jax: 0.10.0
libtpu: 0.0.40
codegen_flags: <defaults>
</compile_context>

<pallas_src>
import functools

import jax
import jax.numpy as jnp
from jax.experimental import pallas as pl
from jax.experimental.pallas import tpu as pltpu

LN_EPS = 1e-5
_VMEM_LIMIT_BYTES = 32 * 1024 * 1024      # safe on v5e/v6e (128 MiB) and v7x (64 MiB)


def _layernorm_f32(x, g, b):
    m = jnp.mean(x, axis=-1, keepdims=True)
    xc = x - m
    var = jnp.mean(xc * xc, axis=-1, keepdims=True)
    return xc * jax.lax.rsqrt(var + LN_EPS) * g + b


# --------------------------------------------------------------------------
# Fused transformer-stack kernel: one grid step = one batch element, all layers.
# --------------------------------------------------------------------------
def _transformer_kernel(h_ref, ln1g_ref, ln1b_ref, wqkv_ref, wout_ref, bout_ref,
                        ln2g_ref, ln2b_ref, w1_ref, b1_ref, w2_ref, b2_ref,
                        o_ref, *, depth, heads, dim_head, scale):
    inner = heads * dim_head
    h = h_ref[0].astype(jnp.float32)                         # (S, D) residual stream, f32

    for d in range(depth):                                   # depth is static -> unrolled
        # ---- PreNorm(Attention) + residual --------------------------------
        y = _layernorm_f32(h, ln1g_ref[d].astype(jnp.float32),
                           ln1b_ref[d].astype(jnp.float32))
        qkv = jnp.dot(y.astype(jnp.bfloat16), wqkv_ref[d],
                      preferred_element_type=jnp.float32)     # (S, 3*inner) f32

        wout_d = wout_ref[d]                                  # (inner, D) bf16, VMEM-resident
        attn_out = jnp.zeros(h.shape, jnp.float32)
        for hh in range(heads):
            c0 = hh * dim_head
            qh = qkv[:, c0:c0 + dim_head].astype(jnp.bfloat16)
            kh = qkv[:, inner + c0:inner + c0 + dim_head].astype(jnp.bfloat16)
            vh = qkv[:, 2 * inner + c0:2 * inner + c0 + dim_head].astype(jnp.bfloat16)

            s = jax.lax.dot_general(qh, kh, (((1,), (1,)), ((), ())),
                                    preferred_element_type=jnp.float32) * scale
            s = s - jnp.max(s, axis=-1, keepdims=True)
            p = jnp.exp(s)
            p = p * pl.reciprocal(jnp.sum(p, axis=-1, keepdims=True), approx=True)
            oh = jnp.dot(p.astype(jnp.bfloat16), vh,
                         preferred_element_type=jnp.float32)  # (S, dh)
            # Out-projection decomposed per head -> no concat / transpose plumbing.
            attn_out = attn_out + jnp.dot(oh.astype(jnp.bfloat16),
                                          wout_d[c0:c0 + dim_head, :],
                                          preferred_element_type=jnp.float32)
        h = h + attn_out + bout_ref[d].astype(jnp.float32)

        # ---- PreNorm(FeedForward) + residual -------------------------------
        y = _layernorm_f32(h, ln2g_ref[d].astype(jnp.float32),
                           ln2b_ref[d].astype(jnp.float32))
        u = jnp.dot(y.astype(jnp.bfloat16), w1_ref[d],
                    preferred_element_type=jnp.float32) + b1_ref[d].astype(jnp.float32)
        # TODO(synk): torch nn.GELU default is exact erf; tanh approximation used here
        # for robust Mosaic lowering (max abs diff ~1e-3).
        u = jax.nn.gelu(u, approximate=True)
        h = h + jnp.dot(u.astype(jnp.bfloat16), w2_ref[d],
                        preferred_element_type=jnp.float32) + b2_ref[d].astype(jnp.float32)

    o_ref[0] = h.astype(o_ref.dtype)


def transformer_stack(h0, params, *, heads, dim_head):
    """Run the full depth-layer transformer on h0:(B,S,D) in a single pallas_call."""
    B, S, D = h0.shape
    depth = params["w_qkv"].shape[0]
    inner = heads * dim_head
    mlp_dim = params["w1"].shape[-1]
    scale = dim_head ** -0.5

    f32, bf16 = jnp.float32, jnp.bfloat16

    def rep(shape):
        # Parameter block: full array, constant block index -> fetched once, VMEM-resident.
        return pl.BlockSpec(shape, lambda b, _n=len(shape): (0,) * _n)

    out = pl.pallas_call(
        functools.partial(_transformer_kernel, depth=depth, heads=heads,
                          dim_head=dim_head, scale=scale),
        out_shape=jax.ShapeDtypeStruct((B, S, D), jnp.float32),
        grid_spec=pltpu.PrefetchScalarGridSpec(
            num_scalar_prefetch=0,
            grid=(B,),
            in_specs=[
                pl.BlockSpec((1, S, D), lambda b: (b, 0, 0)),   # h (per-batch block)
                rep((depth, 1, D)),                             # ln1 gamma
                rep((depth, 1, D)),                             # ln1 beta
                rep((depth, D, 3 * inner)),                     # W_qkv (bf16)
                rep((depth, inner, D)),                         # W_out (bf16)
                rep((depth, 1, D)),                             # b_out
                rep((depth, 1, D)),                             # ln2 gamma
                rep((depth, 1, D)),                             # ln2 beta
                rep((depth, D, mlp_dim)),                       # W1 (bf16)
                rep((depth, 1, mlp_dim)),                       # b1
                rep((depth, mlp_dim, D)),                       # W2 (bf16)
                rep((depth, 1, D)),                             # b2
            ],
            out_specs=pl.BlockSpec((1, S, D), lambda b: (b, 0, 0)),
        ),
        compiler_params=pltpu.CompilerParams(
            dimension_semantics=("parallel",),                  # >=2 steps -> v7x megacore
            vmem_limit_bytes=_VMEM_LIMIT_BYTES),
    )(h0.astype(f32),
      params["ln1_g"].astype(f32), params["ln1_b"].astype(f32),
      params["w_qkv"].astype(bf16),
      params["w_out"].astype(bf16), params["b_out"].astype(f32),
      params["ln2_g"].astype(f32), params["ln2_b"].astype(f32),
      params["w1"].astype(bf16), params["b1"].astype(f32),
      params["w2"].astype(bf16), params["b2"].astype(f32))
    return out


# --------------------------------------------------------------------------
# Full TemporalTransformer forward
# --------------------------------------------------------------------------
def temporal_transformer_forward(x, params, *, heads, dim_head):
    B, n, dim = x.shape
    cls = jnp.broadcast_to(params["cls_token"], (B, 1, dim))
    h = jnp.concatenate([cls, x], axis=1) + params["pos_embedding"][:, : n + 1]
    # TODO(synk): emb_dropout / attention / FF dropouts are rate 0.0 (inference) -> identity.

    h = transformer_stack(h, params, heads=heads, dim_head=dim_head)   # (B, S, D)

    feature = h[:, 0]                                        # pool == "cls"
    # mlp_head in plain JAX (per perf review): LN + (B,dim)@(dim,num_classes=1);
    # a 1-lane Pallas output would only produce fully-masked stores.
    y = _layernorm_f32(feature.astype(jnp.float32),
                       params["head_ln_g"].astype(jnp.float32),
                       params["head_ln_b"].astype(jnp.float32))
    logits = y @ params["head_w"].astype(jnp.float32) + params["head_b"].astype(jnp.float32)
    return logits, feature


# --------------------------------------------------------------------------
# Pure-JAX reference (torch semantics, f32 everywhere)
# --------------------------------------------------------------------------
def temporal_transformer_ref(x, params, *, heads, dim_head):
    B, n, dim = x.shape
    inner = heads * dim_head
    scale = dim_head ** -0.5
    depth = params["w_qkv"].shape[0]

    def ln(z, g, b):
        m = jnp.mean(z, axis=-1, keepdims=True)
        v = jnp.mean((z - m) ** 2, axis=-1, keepdims=True)
        return (z - m) * jax.lax.rsqrt(v + LN_EPS) * g + b

    cls = jnp.broadcast_to(params["cls_token"], (B, 1, dim))
    h = jnp.concatenate([cls, x], axis=1) + params["pos_embedding"][:, : n + 1]
    B, S, D = h.shape

    for d in range(depth):
        y = ln(h, params["ln1_g"][d, 0], params["ln1_b"][d, 0])
        qkv = y @ params["w_qkv"][d]
        q, k, v = jnp.split(qkv, 3, axis=-1)

        def to_heads(t):
            return t.reshape(B, S, heads, dim_head).transpose(0, 2, 1, 3)

        q, k, v = to_heads(q), to_heads(k), to_heads(v)
        dots = jnp.einsum("bhqd,bhkd->bhqk", q, k) * scale
        attn = jax.nn.softmax(dots, axis=-1)
        o = jnp.einsum("bhqk,bhkd->bhqd", attn, v)
        o = o.transpose(0, 2, 1, 3).reshape(B, S, inner)
        h = h + (o @ params["w_out"][d] + params["b_out"][d, 0])

        y = ln(h, params["ln2_g"][d, 0], params["ln2_b"][d, 0])
        u = jax.nn.gelu(y @ params["w1"][d] + params["b1"][d, 0], approximate=True)
        h = h + (u @ params["w2"][d] + params["b2"][d, 0])

    feature = h[:, 0]
    logits = ln(feature, params["head_ln_g"], params["head_ln_b"]) @ params["head_w"] \
        + params["head_b"]
    return logits, feature


if __name__ == "__main__":
    # Small, lane-friendly config consistent with the module:
    # frames_per_clip=7 (seq=8 with cls), dim=128, depth=2, heads=4, dim_head=32,
    # mlp_dim=256, num_classes=1, batch=2.
    frames, dim, depth = 7, 128, 2
    heads, dim_head, mlp_dim, num_classes = 4, 32, 256, 1
    B = 2
    inner = heads * dim_head

    keys = iter(jax.random.split(jax.random.PRNGKey(0), 32))

    def rnd(shape, s=1.0):
        return (s * jax.random.normal(next(keys), shape)).astype(jnp.float32)

    params = {
        "cls_token": rnd((1, 1, dim)),
        "pos_embedding": rnd((1, frames + 1, dim)),
        # per-layer params stacked over depth; linear weights stored pre-transposed (Din, Dout)
        "ln1_g": 1.0 + rnd((depth, 1, dim), 0.1),
        "ln1_b": rnd((depth, 1, dim), 0.05),
        "w_qkv": rnd((depth, dim, 3 * inner), 0.02),
        "w_out": rnd((depth, inner, dim), 0.02),
        "b_out": rnd((depth, 1, dim), 0.01),
        "ln2_g": 1.0 + rnd((depth, 1, dim), 0.1),
        "ln2_b": rnd((depth, 1, dim), 0.05),
        "w1": rnd((depth, dim, mlp_dim), 0.02),
        "b1": rnd((depth, 1, mlp_dim), 0.01),
        "w2": rnd((depth, mlp_dim, dim), 0.02),
        "b2": rnd((depth, 1, dim), 0.01),
        "head_ln_g": 1.0 + rnd((dim,), 0.1),
        "head_ln_b": rnd((dim,), 0.05),
        "head_w": rnd((dim, num_classes), 0.02),
        "head_b": rnd((num_classes,), 0.01),
    }

    x = rnd((B, frames, dim))

    fwd = jax.jit(functools.partial(temporal_transformer_forward,
                                    heads=heads, dim_head=dim_head))
    logits, feature = fwd(x, params)
    logits, feature = jax.block_until_ready((logits, feature))

    ref_logits, ref_feature = temporal_transformer_ref(
        x, params, heads=heads, dim_head=dim_head)

    assert logits.shape == (B, num_classes)
    assert feature.shape == (B, dim)
    # bf16 MXU matmuls (f32 accumulate) + approx reciprocal -> ~1e-3-level deviation
    # vs the pure-f32 reference.
    assert jnp.allclose(feature, ref_feature, atol=2e-2, rtol=2e-2), "feature mismatch"
    assert jnp.allclose(logits, ref_logits, atol=2e-2, rtol=2e-2), "logits mismatch"

    print("KERNEL_OK")
</pallas_src>

<mosaic_0001>
module attributes {stable_mosaic.version = 11 : i64} {
  func.func @_transformer_kernel(%arg0: i32, %arg1: memref<1x8x128xf32, #tpu.memory_space<vmem>>, %arg2: memref<2x1x128xf32, #tpu.memory_space<vmem>>, %arg3: memref<2x1x128xf32, #tpu.memory_space<vmem>>, %arg4: memref<2x128x384xbf16, #tpu.memory_space<vmem>>, %arg5: memref<2x128x128xbf16, #tpu.memory_space<vmem>>, %arg6: memref<2x1x128xf32, #tpu.memory_space<vmem>>, %arg7: memref<2x1x128xf32, #tpu.memory_space<vmem>>, %arg8: memref<2x1x128xf32, #tpu.memory_space<vmem>>, %arg9: memref<2x128x256xbf16, #tpu.memory_space<vmem>>, %arg10: memref<2x1x256xf32, #tpu.memory_space<vmem>>, %arg11: memref<2x256x128xbf16, #tpu.memory_space<vmem>>, %arg12: memref<2x1x128xf32, #tpu.memory_space<vmem>>, %arg13: memref<1x8x128xf32, #tpu.memory_space<vmem>>) attributes {dimension_semantics = [#tpu.dimension_semantics<parallel>], iteration_bounds = array<i64: 2>, scalar_prefetch = 0 : i64, scratch_operands = 0 : i64, tpu.core_type = #tpu.core_type<tc>, window_params = [{transform_indices = @transform_0, window_bounds = array<i64: 1, 8, 128>}, {pipeline_mode = #tpu.pipeline_mode<synchronous>, transform_indices = @transform_1, window_bounds = array<i64: 2, 1, 128>}, {pipeline_mode = #tpu.pipeline_mode<synchronous>, transform_indices = @transform_2, window_bounds = array<i64: 2, 1, 128>}, {pipeline_mode = #tpu.pipeline_mode<synchronous>, transform_indices = @transform_3, window_bounds = array<i64: 2, 128, 384>}, {pipeline_mode = #tpu.pipeline_mode<synchronous>, transform_indices = @transform_4, window_bounds = array<i64: 2, 128, 128>}, {pipeline_mode = #tpu.pipeline_mode<synchronous>, transform_indices = @transform_5, window_bounds = array<i64: 2, 1, 128>}, {pipeline_mode = #tpu.pipeline_mode<synchronous>, transform_indices = @transform_6, window_bounds = array<i64: 2, 1, 128>}, {pipeline_mode = #tpu.pipeline_mode<synchronous>, transform_indices = @transform_7, window_bounds = array<i64: 2, 1, 128>}, {pipeline_mode = #tpu.pipeline_mode<synchronous>, transform_indices = @transform_8, window_bounds = array<i64: 2, 128, 256>}, {pipeline_mode = #tpu.pipeline_mode<synchronous>, transform_indices = @transform_9, window_bounds = array<i64: 2, 1, 256>}, {pipeline_mode = #tpu.pipeline_mode<synchronous>, transform_indices = @transform_10, window_bounds = array<i64: 2, 256, 128>}, {pipeline_mode = #tpu.pipeline_mode<synchronous>, transform_indices = @transform_11, window_bounds = array<i64: 2, 1, 128>}, {transform_indices = @transform_12, window_bounds = array<i64: 1, 8, 128>}]} {
    %c0 = arith.constant 0 : index
    %c0_0 = arith.constant 0 : index
    %c0_1 = arith.constant 0 : index
    %0 = vector.load %arg1[%c0, %c0_0, %c0_1] : memref<1x8x128xf32, #tpu.memory_space<vmem>>, vector<1x8x128xf32>
    %1 = vector.shape_cast %0 : vector<1x8x128xf32> to vector<8x128xf32>
    %c0_2 = arith.constant 0 : index
    %c0_3 = arith.constant 0 : index
    %c0_4 = arith.constant 0 : index
    %2 = vector.load %arg2[%c0_2, %c0_3, %c0_4] : memref<2x1x128xf32, #tpu.memory_space<vmem>>, vector<1x1x128xf32>
    %3 = vector.shape_cast %2 : vector<1x1x128xf32> to vector<1x128xf32>
    %c0_5 = arith.constant 0 : index
    %c0_6 = arith.constant 0 : index
    %c0_7 = arith.constant 0 : index
    %4 = vector.load %arg3[%c0_5, %c0_6, %c0_7] : memref<2x1x128xf32, #tpu.memory_space<vmem>>, vector<1x1x128xf32>
    %5 = vector.shape_cast %4 : vector<1x1x128xf32> to vector<1x128xf32>
    %cst = arith.constant dense<0.000000e+00> : vector<8xf32>
    %6 = vector.multi_reduction <add>, %1, %cst [1] : vector<8x128xf32> to vector<8xf32>
    %7 = vector.shape_cast %6 : vector<8xf32> to vector<8x1xf32>
    %cst_8 = arith.constant 1.280000e+02 : f32
    %8 = vector.broadcast %cst_8 : f32 to vector<8x1xf32>
    %9 = arith.divf %7, %8 : vector<8x1xf32>
    %10 = vector.broadcast %9 : vector<8x1xf32> to vector<8x128xf32>
    %11 = arith.subf %1, %10 : vector<8x128xf32>
    %12 = arith.mulf %11, %11 : vector<8x128xf32>
    %cst_9 = arith.constant dense<0.000000e+00> : vector<8xf32>
    %13 = vector.multi_reduction <add>, %12, %cst_9 [1] : vector<8x128xf32> to vector<8xf32>
    %14 = vector.shape_cast %13 : vector<8xf32> to vector<8x1xf32>
    %cst_10 = arith.constant 1.280000e+02 : f32
    %15 = vector.broadcast %cst_10 : f32 to vector<8x1xf32>
    %16 = arith.divf %14, %15 : vector<8x1xf32>
    %cst_11 = arith.constant 9.99999974E-6 : f32
    %17 = vector.broadcast %cst_11 : f32 to vector<8x1xf32>
    %18 = arith.addf %16, %17 : vector<8x1xf32>
    %19 = math.rsqrt %18 : vector<8x1xf32>
    %20 = vector.broadcast %19 : vector<8x1xf32> to vector<8x128xf32>
    %21 = arith.mulf %11, %20 : vector<8x128xf32>
    %22 = vector.broadcast %3 : vector<1x128xf32> to vector<8x128xf32>
    %23 = arith.mulf %21, %22 : vector<8x128xf32>
    %24 = vector.broadcast %5 : vector<1x128xf32> to vector<8x128xf32>
    %25 = arith.addf %23, %24 : vector<8x128xf32>
    %26 = arith.truncf %25 : vector<8x128xf32> to vector<8x128xbf16>
    %c0_12 = arith.constant 0 : index
    %c0_13 = arith.constant 0 : index
    %c0_14 = arith.constant 0 : index
    %27 = vector.load %arg4[%c0_12, %c0_13, %c0_14] : memref<2x128x384xbf16, #tpu.memory_space<vmem>>, vector<1x128x384xbf16>
    %28 = vector.shape_cast %27 : vector<1x128x384xbf16> to vector<128x384xbf16>
    %cst_15 = arith.constant dense<0.000000e+00> : vector<8x384xf32>
    %29 = tpu.matmul %26, %28, %cst_15 {dimension_numbers = #tpu.dot_dimension_numbers<[1], [0], [0], [1], [0, 0, 1, 1], [], []>} : vector<8x128xbf16>, vector<128x384xbf16>, vector<8x384xf32> -> vector<8x384xf32>
    %c0_16 = arith.constant 0 : index
    %c0_17 = arith.constant 0 : index
    %c0_18 = arith.constant 0 : index
    %30 = vector.load %arg5[%c0_16, %c0_17, %c0_18] : memref<2x128x128xbf16, #tpu.memory_space<vmem>>, vector<1x128x128xbf16>
    %31 = vector.shape_cast %30 : vector<1x128x128xbf16> to vector<128x128xbf16>
    %cst_19 = arith.constant 0.000000e+00 : f32
    %32 = vector.broadcast %cst_19 : f32 to vector<8x128xf32>
    %33 = vector.extract_strided_slice %29 {offsets = [0, 0], sizes = [8, 32], strides = [1, 1]} : vector<8x384xf32> to vector<8x32xf32>
    %34 = arith.truncf %33 : vector<8x32xf32> to vector<8x32xbf16>
    %35 = vector.extract_strided_slice %29 {offsets = [0, 128], sizes = [8, 32], strides = [1, 1]} : vector<8x384xf32> to vector<8x32xf32>
    %36 = arith.truncf %35 : vector<8x32xf32> to vector<8x32xbf16>
    %37 = vector.extract_strided_slice %29 {offsets = [0, 256], sizes = [8, 32], strides = [1, 1]} : vector<8x384xf32> to vector<8x32xf32>
    %38 = arith.truncf %37 : vector<8x32xf32> to vector<8x32xbf16>
    %cst_20 = arith.constant dense<0.000000e+00> : vector<8x8xf32>
    %39 = tpu.matmul %34, %36, %cst_20 {dimension_numbers = #tpu.dot_dimension_numbers<[1], [1], [0], [0], [0, 0, 1, 0], [], []>} : vector<8x32xbf16>, vector<8x32xbf16>, vector<8x8xf32> -> vector<8x8xf32>
    %cst_21 = arith.constant 0.176776692 : f32
    %40 = vector.broadcast %cst_21 : f32 to vector<8x8xf32>
    %41 = arith.mulf %39, %40 : vector<8x8xf32>
    %cst_22 = arith.constant dense<0xFF800000> : vector<8xf32>
    %42 = vector.multi_reduction <maximumf>, %41, %cst_22 [1] : vector<8x8xf32> to vector<8xf32>
    %43 = vector.shape_cast %42 : vector<8xf32> to vector<8x1xf32>
    %44 = vector.broadcast %43 : vector<8x1xf32> to vector<8x8xf32>
    %45 = arith.subf %41, %44 : vector<8x8xf32>
    %46 = math.exp %45 : vector<8x8xf32>
    %cst_23 = arith.constant dense<0.000000e+00> : vector<8xf32>
    %47 = vector.multi_reduction <add>, %46, %cst_23 [1] : vector<8x8xf32> to vector<8xf32>
    %48 = vector.shape_cast %47 : vector<8xf32> to vector<8x1xf32>
    %49 = tpu.reciprocal %48 {approx = true} : vector<8x1xf32> -> vector<8x1xf32>
    %50 = vector.broadcast %49 : vector<8x1xf32> to vector<8x8xf32>
    %51 = arith.mulf %46, %50 : vector<8x8xf32>
    %52 = arith.truncf %51 : vector<8x8xf32> to vector<8x8xbf16>
    %cst_24 = arith.constant dense<0.000000e+00> : vector<8x32xf32>
    %53 = tpu.matmul %52, %38, %cst_24 {dimension_numbers = #tpu.dot_dimension_numbers<[1], [0], [0], [1], [0, 0, 1, 1], [], []>} : vector<8x8xbf16>, vector<8x32xbf16>, vector<8x32xf32> -> vector<8x32xf32>
    %54 = arith.truncf %53 : vector<8x32xf32> to vector<8x32xbf16>
    %55 = vector.extract_strided_slice %31 {offsets = [0, 0], sizes = [32, 128], strides = [1, 1]} : vector<128x128xbf16> to vector<32x128xbf16>
    %cst_25 = arith.constant dense<0.000000e+00> : vector<8x128xf32>
    %56 = tpu.matmul %54, %55, %cst_25 {dimension_numbers = #tpu.dot_dimension_numbers<[1], [0], [0], [1], [0, 0, 1, 1], [], []>} : vector<8x32xbf16>, vector<32x128xbf16>, vector<8x128xf32> -> vector<8x128xf32>
    %57 = arith.addf %32, %56 : vector<8x128xf32>
    %58 = vector.extract_strided_slice %29 {offsets = [0, 32], sizes = [8, 32], strides = [1, 1]} : vector<8x384xf32> to vector<8x32xf32>
    %59 = arith.truncf %58 : vector<8x32xf32> to vector<8x32xbf16>
    %60 = vector.extract_strided_slice %29 {offsets = [0, 160], sizes = [8, 32], strides = [1, 1]} : vector<8x384xf32> to vector<8x32xf32>
    %61 = arith.truncf %60 : vector<8x32xf32> to vector<8x32xbf16>
    %62 = vector.extract_strided_slice %29 {offsets = [0, 288], sizes = [8, 32], strides = [1, 1]} : vector<8x384xf32> to vector<8x32xf32>
    %63 = arith.truncf %62 : vector<8x32xf32> to vector<8x32xbf16>
    %cst_26 = arith.constant dense<0.000000e+00> : vector<8x8xf32>
    %64 = tpu.matmul %59, %61, %cst_26 {dimension_numbers = #tpu.dot_dimension_numbers<[1], [1], [0], [0], [0, 0, 1, 0], [], []>} : vector<8x32xbf16>, vector<8x32xbf16>, vector<8x8xf32> -> vector<8x8xf32>
    %cst_27 = arith.constant 0.176776692 : f32
    %65 = vector.broadcast %cst_27 : f32 to vector<8x8xf32>
    %66 = arith.mulf %64, %65 : vector<8x8xf32>
    %cst_28 = arith.constant dense<0xFF800000> : vector<8xf32>
    %67 = vector.multi_reduction <maximumf>, %66, %cst_28 [1] : vector<8x8xf32> to vector<8xf32>
    %68 = vector.shape_cast %67 : vector<8xf32> to vector<8x1xf32>
    %69 = vector.broadcast %68 : vector<8x1xf32> to vector<8x8xf32>
    %70 = arith.subf %66, %69 : vector<8x8xf32>
    %71 = math.exp %70 : vector<8x8xf32>
    %cst_29 = arith.constant dense<0.000000e+00> : vector<8xf32>
    %72 = vector.multi_reduction <add>, %71, %cst_29 [1] : vector<8x8xf32> to vector<8xf32>
    %73 = vector.shape_cast %72 : vector<8xf32> to vector<8x1xf32>
    %74 = tpu.reciprocal %73 {approx = true} : vector<8x1xf32> -> vector<8x1xf32>
    %75 = vector.broadcast %74 : vector<8x1xf32> to vector<8x8xf32>
    %76 = arith.mulf %71, %75 : vector<8x8xf32>
    %77 = arith.truncf %76 : vector<8x8xf32> to vector<8x8xbf16>
    %cst_30 = arith.constant dense<0.000000e+00> : vector<8x32xf32>
    %78 = tpu.matmul %77, %63, %cst_30 {dimension_numbers = #tpu.dot_dimension_numbers<[1], [0], [0], [1], [0, 0, 1, 1], [], []>} : vector<8x8xbf16>, vector<8x32xbf16>, vector<8x32xf32> -> vector<8x32xf32>
    %79 = arith.truncf %78 : vector<8x32xf32> to vector<8x32xbf16>
    %80 = vector.extract_strided_slice %31 {offsets = [32, 0], sizes = [32, 128], strides = [1, 1]} : vector<128x128xbf16> to vector<32x128xbf16>
    %cst_31 = arith.constant dense<0.000000e+00> : vector<8x128xf32>
    %81 = tpu.matmul %79, %80, %cst_31 {dimension_numbers = #tpu.dot_dimension_numbers<[1], [0], [0], [1], [0, 0, 1, 1], [], []>} : vector<8x32xbf16>, vector<32x128xbf16>, vector<8x128xf32> -> vector<8x128xf32>
    %82 = arith.addf %57, %81 : vector<8x128xf32>
    %83 = vector.extract_strided_slice %29 {offsets = [0, 64], sizes = [8, 32], strides = [1, 1]} : vector<8x384xf32> to vector<8x32xf32>
    %84 = arith.truncf %83 : vector<8x32xf32> to vector<8x32xbf16>
    %85 = vector.extract_strided_slice %29 {offsets = [0, 192], sizes = [8, 32], strides = [1, 1]} : vector<8x384xf32> to vector<8x32xf32>
    %86 = arith.truncf %85 : vector<8x32xf32> to vector<8x32xbf16>
    %87 = vector.extract_strided_slice %29 {offsets = [0, 320], sizes = [8, 32], strides = [1, 1]} : vector<8x384xf32> to vector<8x32xf32>
    %88 = arith.truncf %87 : vector<8x32xf32> to vector<8x32xbf16>
    %cst_32 = arith.constant dense<0.000000e+00> : vector<8x8xf32>
    %89 = tpu.matmul %84, %86, %cst_32 {dimension_numbers = #tpu.dot_dimension_numbers<[1], [1], [0], [0], [0, 0, 1, 0], [], []>} : vector<8x32xbf16>, vector<8x32xbf16>, vector<8x8xf32> -> vector<8x8xf32>
    %cst_33 = arith.constant 0.176776692 : f32
    %90 = vector.broadcast %cst_33 : f32 to vector<8x8xf32>
    %91 = arith.mulf %89, %90 : vector<8x8xf32>
    %cst_34 = arith.constant dense<0xFF800000> : vector<8xf32>
    %92 = vector.multi_reduction <maximumf>, %91, %cst_34 [1] : vector<8x8xf32> to vector<8xf32>
    %93 = vector.shape_cast %92 : vector<8xf32> to vector<8x1xf32>
    %94 = vector.broadcast %93 : vector<8x1xf32> to vector<8x8xf32>
    %95 = arith.subf %91, %94 : vector<8x8xf32>
    %96 = math.exp %95 : vector<8x8xf32>
    %cst_35 = arith.constant dense<0.000000e+00> : vector<8xf32>
    %97 = vector.multi_reduction <add>, %96, %cst_35 [1] : vector<8x8xf32> to vector<8xf32>
    %98 = vector.shape_cast %97 : vector<8xf32> to vector<8x1xf32>
    %99 = tpu.reciprocal %98 {approx = true} : vector<8x1xf32> -> vector<8x1xf32>
    %100 = vector.broadcast %99 : vector<8x1xf32> to vector<8x8xf32>
    %101 = arith.mulf %96, %100 : vector<8x8xf32>
    %102 = arith.truncf %101 : vector<8x8xf32> to vector<8x8xbf16>
    %cst_36 = arith.constant dense<0.000000e+00> : vector<8x32xf32>
    %103 = tpu.matmul %102, %88, %cst_36 {dimension_numbers = #tpu.dot_dimension_numbers<[1], [0], [0], [1], [0, 0, 1, 1], [], []>} : vector<8x8xbf16>, vector<8x32xbf16>, vector<8x32xf32> -> vector<8x32xf32>
    %104 = arith.truncf %103 : vector<8x32xf32> to vector<8x32xbf16>
    %105 = vector.extract_strided_slice %31 {offsets = [64, 0], sizes = [32, 128], strides = [1, 1]} : vector<128x128xbf16> to vector<32x128xbf16>
    %cst_37 = arith.constant dense<0.000000e+00> : vector<8x128xf32>
    %106 = tpu.matmul %104, %105, %cst_37 {dimension_numbers = #tpu.dot_dimension_numbers<[1], [0], [0], [1], [0, 0, 1, 1], [], []>} : vector<8x32xbf16>, vector<32x128xbf16>, vector<8x128xf32> -> vector<8x128xf32>
    %107 = arith.addf %82, %106 : vector<8x128xf32>
    %108 = vector.extract_strided_slice %29 {offsets = [0, 96], sizes = [8, 32], strides = [1, 1]} : vector<8x384xf32> to vector<8x32xf32>
    %109 = arith.truncf %108 : vector<8x32xf32> to vector<8x32xbf16>
    %110 = vector.extract_strided_slice %29 {offsets = [0, 224], sizes = [8, 32], strides = [1, 1]} : vector<8x384xf32> to vector<8x32xf32>
    %111 = arith.truncf %110 : vector<8x32xf32> to vector<8x32xbf16>
    %112 = vector.extract_strided_slice %29 {offsets = [0, 352], sizes = [8, 32], strides = [1, 1]} : vector<8x384xf32> to vector<8x32xf32>
    %113 = arith.truncf %112 : vector<8x32xf32> to vector<8x32xbf16>
    %cst_38 = arith.constant dense<0.000000e+00> : vector<8x8xf32>
    %114 = tpu.matmul %109, %111, %cst_38 {dimension_numbers = #tpu.dot_dimension_numbers<[1], [1], [0], [0], [0, 0, 1, 0], [], []>} : vector<8x32xbf16>, vector<8x32xbf16>, vector<8x8xf32> -> vector<8x8xf32>
    %cst_39 = arith.constant 0.176776692 : f32
    %115 = vector.broadcast %cst_39 : f32 to vector<8x8xf32>
    %116 = arith.mulf %114, %115 : vector<8x8xf32>
    %cst_40 = arith.constant dense<0xFF800000> : vector<8xf32>
    %117 = vector.multi_reduction <maximumf>, %116, %cst_40 [1] : vector<8x8xf32> to vector<8xf32>
    %118 = vector.shape_cast %117 : vector<8xf32> to vector<8x1xf32>
    %119 = vector.broadcast %118 : vector<8x1xf32> to vector<8x8xf32>
    %120 = arith.subf %116, %119 : vector<8x8xf32>
    %121 = math.exp %120 : vector<8x8xf32>
    %cst_41 = arith.constant dense<0.000000e+00> : vector<8xf32>
    %122 = vector.multi_reduction <add>, %121, %cst_41 [1] : vector<8x8xf32> to vector<8xf32>
    %123 = vector.shape_cast %122 : vector<8xf32> to vector<8x1xf32>
    %124 = tpu.reciprocal %123 {approx = true} : vector<8x1xf32> -> vector<8x1xf32>
    %125 = vector.broadcast %124 : vector<8x1xf32> to vector<8x8xf32>
    %126 = arith.mulf %121, %125 : vector<8x8xf32>
    %127 = arith.truncf %126 : vector<8x8xf32> to vector<8x8xbf16>
    %cst_42 = arith.constant dense<0.000000e+00> : vector<8x32xf32>
    %128 = tpu.matmul %127, %113, %cst_42 {dimension_numbers = #tpu.dot_dimension_numbers<[1], [0], [0], [1], [0, 0, 1, 1], [], []>} : vector<8x8xbf16>, vector<8x32xbf16>, vector<8x32xf32> -> vector<8x32xf32>
    %129 = arith.truncf %128 : vector<8x32xf32> to vector<8x32xbf16>
    %130 = vector.extract_strided_slice %31 {offsets = [96, 0], sizes = [32, 128], strides = [1, 1]} : vector<128x128xbf16> to vector<32x128xbf16>
    %cst_43 = arith.constant dense<0.000000e+00> : vector<8x128xf32>
    %131 = tpu.matmul %129, %130, %cst_43 {dimension_numbers = #tpu.dot_dimension_numbers<[1], [0], [0], [1], [0, 0, 1, 1], [], []>} : vector<8x32xbf16>, vector<32x128xbf16>, vector<8x128xf32> -> vector<8x128xf32>
    %132 = arith.addf %107, %131 : vector<8x128xf32>
    %133 = arith.addf %1, %132 : vector<8x128xf32>
    %c0_44 = arith.constant 0 : index
    %c0_45 = arith.constant 0 : index
    %c0_46 = arith.constant 0 : index
    %134 = vector.load %arg6[%c0_44, %c0_45, %c0_46] : memref<2x1x128xf32, #tpu.memory_space<vmem>>, vector<1x1x128xf32>
    %135 = vector.shape_cast %134 : vector<1x1x128xf32> to vector<1x128xf32>
    %136 = vector.broadcast %135 : vector<1x128xf32> to vector<8x128xf32>
    %137 = arith.addf %133, %136 : vector<8x128xf32>
    %c0_47 = arith.constant 0 : index
    %c0_48 = arith.constant 0 : index
    %c0_49 = arith.constant 0 : index
    %138 = vector.load %arg7[%c0_47, %c0_48, %c0_49] : memref<2x1x128xf32, #tpu.memory_space<vmem>>, vector<1x1x128xf32>
    %139 = vector.shape_cast %138 : vector<1x1x128xf32> to vector<1x128xf32>
    %c0_50 = arith.constant 0 : index
    %c0_51 = arith.constant 0 : index
    %c0_52 = arith.constant 0 : index
    %140 = vector.load %arg8[%c0_50, %c0_51, %c0_52] : memref<2x1x128xf32, #tpu.memory_space<vmem>>, vector<1x1x128xf32>
    %141 = vector.shape_cast %140 : vector<1x1x128xf32> to vector<1x128xf32>
    %cst_53 = arith.constant dense<0.000000e+00> : vector<8xf32>
    %142 = vector.multi_reduction <add>, %137, %cst_53 [1] : vector<8x128xf32> to vector<8xf32>
    %143 = vector.shape_cast %142 : vector<8xf32> to vector<8x1xf32>
    %cst_54 = arith.constant 1.280000e+02 : f32
    %144 = vector.broadcast %cst_54 : f32 to vector<8x1xf32>
    %145 = arith.divf %143, %144 : vector<8x1xf32>
    %146 = vector.broadcast %145 : vector<8x1xf32> to vector<8x128xf32>
    %147 = arith.subf %137, %146 : vector<8x128xf32>
    %148 = arith.mulf %147, %147 : vector<8x128xf32>
    %cst_55 = arith.constant dense<0.000000e+00> : vector<8xf32>
    %149 = vector.multi_reduction <add>, %148, %cst_55 [1] : vector<8x128xf32> to vector<8xf32>
    %150 = vector.shape_cast %149 : vector<8xf32> to vector<8x1xf32>
    %cst_56 = arith.constant 1.280000e+02 : f32
    %151 = vector.broadcast %cst_56 : f32 to vector<8x1xf32>
    %152 = arith.divf %150, %151 : vector<8x1xf32>
    %cst_57 = arith.constant 9.99999974E-6 : f32
    %153 = vector.broadcast %cst_57 : f32 to vector<8x1xf32>
    %154 = arith.addf %152, %153 : vector<8x1xf32>
    %155 = math.rsqrt %154 : vector<8x1xf32>
    %156 = vector.broadcast %155 : vector<8x1xf32> to vector<8x128xf32>
    %157 = arith.mulf %147, %156 : vector<8x128xf32>
    %158 = vector.broadcast %139 : vector<1x128xf32> to vector<8x128xf32>
    %159 = arith.mulf %157, %158 : vector<8x128xf32>
    %160 = vector.broadcast %141 : vector<1x128xf32> to vector<8x128xf32>
    %161 = arith.addf %159, %160 : vector<8x128xf32>
    %162 = arith.truncf %161 : vector<8x128xf32> to vector<8x128xbf16>
    %c0_58 = arith.constant 0 : index
    %c0_59 = arith.constant 0 : index
    %c0_60 = arith.constant 0 : index
    %163 = vector.load %arg9[%c0_58, %c0_59, %c0_60] : memref<2x128x256xbf16, #tpu.memory_space<vmem>>, vector<1x128x256xbf16>
    %164 = vector.shape_cast %163 : vector<1x128x256xbf16> to vector<128x256xbf16>
    %cst_61 = arith.constant dense<0.000000e+00> : vector<8x256xf32>
    %165 = tpu.matmul %162, %164, %cst_61 {dimension_numbers = #tpu.dot_dimension_numbers<[1], [0], [0], [1], [0, 0, 1, 1], [], []>} : vector<8x128xbf16>, vector<128x256xbf16>, vector<8x256xf32> -> vector<8x256xf32>
    %c0_62 = arith.constant 0 : index
    %c0_63 = arith.constant 0 : index
    %c0_64 = arith.constant 0 : index
    %166 = vector.load %arg10[%c0_62, %c0_63, %c0_64] : memref<2x1x256xf32, #tpu.memory_space<vmem>>, vector<1x1x256xf32>
    %167 = vector.shape_cast %166 : vector<1x1x256xf32> to vector<1x256xf32>
    %168 = vector.broadcast %167 : vector<1x256xf32> to vector<8x256xf32>
    %169 = arith.addf %165, %168 : vector<8x256xf32>
    %170 = arith.mulf %169, %169 : vector<8x256xf32>
    %171 = arith.mulf %169, %170 : vector<8x256xf32>
    %cst_65 = arith.constant 4.471500e-02 : f32
    %172 = vector.broadcast %cst_65 : f32 to vector<8x256xf32>
    %173 = arith.mulf %172, %171 : vector<8x256xf32>
    %174 = arith.addf %169, %173 : vector<8x256xf32>
    %cst_66 = arith.constant 0.797884583 : f32
    %175 = vector.broadcast %cst_66 : f32 to vector<8x256xf32>
    %176 = arith.mulf %175, %174 : vector<8x256xf32>
    %177 = math.tanh %176 : vector<8x256xf32>
    %cst_67 = arith.constant 1.000000e+00 : f32
    %178 = vector.broadcast %cst_67 : f32 to vector<8x256xf32>
    %179 = arith.addf %178, %177 : vector<8x256xf32>
    %cst_68 = arith.constant 5.000000e-01 : f32
    %180 = vector.broadcast %cst_68 : f32 to vector<8x256xf32>
    %181 = arith.mulf %180, %179 : vector<8x256xf32>
    %182 = arith.mulf %169, %181 : vector<8x256xf32>
    %183 = arith.truncf %182 : vector<8x256xf32> to vector<8x256xbf16>
    %c0_69 = arith.constant 0 : index
    %c0_70 = arith.constant 0 : index
    %c0_71 = arith.constant 0 : index
    %184 = vector.load %arg11[%c0_69, %c0_70, %c0_71] : memref<2x256x128xbf16, #tpu.memory_space<vmem>>, vector<1x256x128xbf16>
    %185 = vector.shape_cast %184 : vector<1x256x128xbf16> to vector<256x128xbf16>
    %cst_72 = arith.constant dense<0.000000e+00> : vector<8x128xf32>
    %186 = tpu.matmul %183, %185, %cst_72 {dimension_numbers = #tpu.dot_dimension_numbers<[1], [0], [0], [1], [0, 0, 1, 1], [], []>} : vector<8x256xbf16>, vector<256x128xbf16>, vector<8x128xf32> -> vector<8x128xf32>
    %187 = arith.addf %137, %186 : vector<8x128xf32>
    %c0_73 = arith.constant 0 : index
    %c0_74 = arith.constant 0 : index
    %c0_75 = arith.constant 0 : index
    %188 = vector.load %arg12[%c0_73, %c0_74, %c0_75] : memref<2x1x128xf32, #tpu.memory_space<vmem>>, vector<1x1x128xf32>
    %189 = vector.shape_cast %188 : vector<1x1x128xf32> to vector<1x128xf32>
    %190 = vector.broadcast %189 : vector<1x128xf32> to vector<8x128xf32>
    %191 = arith.addf %187, %190 : vector<8x128xf32>
    %c1 = arith.constant 1 : index
    %c0_76 = arith.constant 0 : index
    %c0_77 = arith.constant 0 : index
    %192 = vector.load %arg2[%c1, %c0_76, %c0_77] : memref<2x1x128xf32, #tpu.memory_space<vmem>>, vector<1x1x128xf32>
    %193 = vector.shape_cast %192 : vector<1x1x128xf32> to vector<1x128xf32>
    %c1_78 = arith.constant 1 : index
    %c0_79 = arith.constant 0 : index
    %c0_80 = arith.constant 0 : index
    %194 = vector.load %arg3[%c1_78, %c0_79, %c0_80] : memref<2x1x128xf32, #tpu.memory_space<vmem>>, vector<1x1x128xf32>
    %195 = vector.shape_cast %194 : vector<1x1x128xf32> to vector<1x128xf32>
    %cst_81 = arith.constant dense<0.000000e+00> : vector<8xf32>
    %196 = vector.multi_reduction <add>, %191, %cst_81 [1] : vector<8x128xf32> to vector<8xf32>
    %197 = vector.shape_cast %196 : vector<8xf32> to vector<8x1xf32>
    %cst_82 = arith.constant 1.280000e+02 : f32
    %198 = vector.broadcast %cst_82 : f32 to vector<8x1xf32>
    %199 = arith.divf %197, %198 : vector<8x1xf32>
    %200 = vector.broadcast %199 : vector<8x1xf32> to vector<8x128xf32>
    %201 = arith.subf %191, %200 : vector<8x128xf32>
    %202 = arith.mulf %201, %201 : vector<8x128xf32>
    %cst_83 = arith.constant dense<0.000000e+00> : vector<8xf32>
    %203 = vector.multi_reduction <add>, %202, %cst_83 [1] : vector<8x128xf32> to vector<8xf32>
    %204 = vector.shape_cast %203 : vector<8xf32> to vector<8x1xf32>
    %cst_84 = arith.constant 1.280000e+02 : f32
    %205 = vector.broadcast %cst_84 : f32 to vector<8x1xf32>
    %206 = arith.divf %204, %205 : vector<8x1xf32>
    %cst_85 = arith.constant 9.99999974E-6 : f32
    %207 = vector.broadcast %cst_85 : f32 to vector<8x1xf32>
    %208 = arith.addf %206, %207 : vector<8x1xf32>
    %209 = math.rsqrt %208 : vector<8x1xf32>
    %210 = vector.broadcast %209 : vector<8x1xf32> to vector<8x128xf32>
    %211 = arith.mulf %201, %210 : vector<8x128xf32>
    %212 = vector.broadcast %193 : vector<1x128xf32> to vector<8x128xf32>
    %213 = arith.mulf %211, %212 : vector<8x128xf32>
    %214 = vector.broadcast %195 : vector<1x128xf32> to vector<8x128xf32>
    %215 = arith.addf %213, %214 : vector<8x128xf32>
    %216 = arith.truncf %215 : vector<8x128xf32> to vector<8x128xbf16>
    %c1_86 = arith.constant 1 : index
    %c0_87 = arith.constant 0 : index
    %c0_88 = arith.constant 0 : index
    %217 = vector.load %arg4[%c1_86, %c0_87, %c0_88] : memref<2x128x384xbf16, #tpu.memory_space<vmem>>, vector<1x128x384xbf16>
    %218 = vector.shape_cast %217 : vector<1x128x384xbf16> to vector<128x384xbf16>
    %cst_89 = arith.constant dense<0.000000e+00> : vector<8x384xf32>
    %219 = tpu.matmul %216, %218, %cst_89 {dimension_numbers = #tpu.dot_dimension_numbers<[1], [0], [0], [1], [0, 0, 1, 1], [], []>} : vector<8x128xbf16>, vector<128x384xbf16>, vector<8x384xf32> -> vector<8x384xf32>
    %c1_90 = arith.constant 1 : index
    %c0_91 = arith.constant 0 : index
    %c0_92 = arith.constant 0 : index
    %220 = vector.load %arg5[%c1_90, %c0_91, %c0_92] : memref<2x128x128xbf16, #tpu.memory_space<vmem>>, vector<1x128x128xbf16>
    %221 = vector.shape_cast %220 : vector<1x128x128xbf16> to vector<128x128xbf16>
    %cst_93 = arith.constant 0.000000e+00 : f32
    %222 = vector.broadcast %cst_93 : f32 to vector<8x128xf32>
    %223 = vector.extract_strided_slice %219 {offsets = [0, 0], sizes = [8, 32], strides = [1, 1]} : vector<8x384xf32> to vector<8x32xf32>
    %224 = arith.truncf %223 : vector<8x32xf32> to vector<8x32xbf16>
    %225 = vector.extract_strided_slice %219 {offsets = [0, 128], sizes = [8, 32], strides = [1, 1]} : vector<8x384xf32> to vector<8x32xf32>
    %226 = arith.truncf %225 : vector<8x32xf32> to vector<8x32xbf16>
    %227 = vector.extract_strided_slice %219 {offsets = [0, 256], sizes = [8, 32], strides = [1, 1]} : vector<8x384xf32> to vector<8x32xf32>
    %228 = arith.truncf %227 : vector<8x32xf32> to vector<8x32xbf16>
    %cst_94 = arith.constant dense<0.000000e+00> : vector<8x8xf32>
    %229 = tpu.matmul %224, %226, %cst_94 {dimension_numbers = #tpu.dot_dimension_numbers<[1], [1], [0], [0], [0, 0, 1, 0], [], []>} : vector<8x32xbf16>, vector<8x32xbf16>, vector<8x8xf32> -> vector<8x8xf32>
    %cst_95 = arith.constant 0.176776692 : f32
    %230 = vector.broadcast %cst_95 : f32 to vector<8x8xf32>
    %231 = arith.mulf %229, %230 : vector<8x8xf32>
    %cst_96 = arith.constant dense<0xFF800000> : vector<8xf32>
    %232 = vector.multi_reduction <maximumf>, %231, %cst_96 [1] : vector<8x8xf32> to vector<8xf32>
    %233 = vector.shape_cast %232 : vector<8xf32> to vector<8x1xf32>
    %234 = vector.broadcast %233 : vector<8x1xf32> to vector<8x8xf32>
    %235 = arith.subf %231, %234 : vector<8x8xf32>
    %236 = math.exp %235 : vector<8x8xf32>
    %cst_97 = arith.constant dense<0.000000e+00> : vector<8xf32>
    %237 = vector.multi_reduction <add>, %236, %cst_97 [1] : vector<8x8xf32> to vector<8xf32>
    %238 = vector.shape_cast %237 : vector<8xf32> to vector<8x1xf32>
    %239 = tpu.reciprocal %238 {approx = true} : vector<8x1xf32> -> vector<8x1xf32>
    %240 = vector.broadcast %239 : vector<8x1xf32> to vector<8x8xf32>
    %241 = arith.mulf %236, %240 : vector<8x8xf32>
    %242 = arith.truncf %241 : vector<8x8xf32> to vector<8x8xbf16>
    %cst_98 = arith.constant dense<0.000000e+00> : vector<8x32xf32>
    %243 = tpu.matmul %242, %228, %cst_98 {dimension_numbers = #tpu.dot_dimension_numbers<[1], [0], [0], [1], [0, 0, 1, 1], [], []>} : vector<8x8xbf16>, vector<8x32xbf16>, vector<8x32xf32> -> vector<8x32xf32>
    %244 = arith.truncf %243 : vector<8x32xf32> to vector<8x32xbf16>
    %245 = vector.extract_strided_slice %221 {offsets = [0, 0], sizes = [32, 128], strides = [1, 1]} : vector<128x128xbf16> to vector<32x128xbf16>
    %cst_99 = arith.constant dense<0.000000e+00> : vector<8x128xf32>
    %246 = tpu.matmul %244, %245, %cst_99 {dimension_numbers = #tpu.dot_dimension_numbers<[1], [0], [0], [1], [0, 0, 1, 1], [], []>} : vector<8x32xbf16>, vector<32x128xbf16>, vector<8x128xf32> -> vector<8x128xf32>
    %247 = arith.addf %222, %246 : vector<8x128xf32>
    %248 = vector.extract_strided_slice %219 {offsets = [0, 32], sizes = [8, 32], strides = [1, 1]} : vector<8x384xf32> to vector<8x32xf32>
    %249 = arith.truncf %248 : vector<8x32xf32> to vector<8x32xbf16>
    %250 = vector.extract_strided_slice %219 {offsets = [0, 160], sizes = [8, 32], strides = [1, 1]} : vector<8x384xf32> to vector<8x32xf32>
    %251 = arith.truncf %250 : vector<8x32xf32> to vector<8x32xbf16>
    %252 = vector.extract_strided_slice %219 {offsets = [0, 288], sizes = [8, 32], strides = [1, 1]} : vector<8x384xf32> to vector<8x32xf32>
    %253 = arith.truncf %252 : vector<8x32xf32> to vector<8x32xbf16>
    %cst_100 = arith.constant dense<0.000000e+00> : vector<8x8xf32>
    %254 = tpu.matmul %249, %251, %cst_100 {dimension_numbers = #tpu.dot_dimension_numbers<[1], [1], [0], [0], [0, 0, 1, 0], [], []>} : vector<8x32xbf16>, vector<8x32xbf16>, vector<8x8xf32> -> vector<8x8xf32>
    %cst_101 = arith.constant 0.176776692 : f32
    %255 = vector.broadcast %cst_101 : f32 to vector<8x8xf32>
    %256 = arith.mulf %254, %255 : vector<8x8xf32>
    %cst_102 = arith.constant dense<0xFF800000> : vector<8xf32>
    %257 = vector.multi_reduction <maximumf>, %256, %cst_102 [1] : vector<8x8xf32> to vector<8xf32>
    %258 = vector.shape_cast %257 : vector<8xf32> to vector<8x1xf32>
    %259 = vector.broadcast %258 : vector<8x1xf32> to vector<8x8xf32>
    %260 = arith.subf %256, %259 : vector<8x8xf32>
    %261 = math.exp %260 : vector<8x8xf32>
    %cst_103 = arith.constant dense<0.000000e+00> : vector<8xf32>
    %262 = vector.multi_reduction <add>, %261, %cst_103 [1] : vector<8x8xf32> to vector<8xf32>
    %263 = vector.shape_cast %262 : vector<8xf32> to vector<8x1xf32>
    %264 = tpu.reciprocal %263 {approx = true} : vector<8x1xf32> -> vector<8x1xf32>
    %265 = vector.broadcast %264 : vector<8x1xf32> to vector<8x8xf32>
    %266 = arith.mulf %261, %265 : vector<8x8xf32>
    %267 = arith.truncf %266 : vector<8x8xf32> to vector<8x8xbf16>
    %cst_104 = arith.constant dense<0.000000e+00> : vector<8x32xf32>
    %268 = tpu.matmul %267, %253, %cst_104 {dimension_numbers = #tpu.dot_dimension_numbers<[1], [0], [0], [1], [0, 0, 1, 1], [], []>} : vector<8x8xbf16>, vector<8x32xbf16>, vector<8x32xf32> -> vector<8x32xf32>
    %269 = arith.truncf %268 : vector<8x32xf32> to vector<8x32xbf16>
    %270 = vector.extract_strided_slice %221 {offsets = [32, 0], sizes = [32, 128], strides = [1, 1]} : vector<128x128xbf16> to vector<32x128xbf16>
    %cst_105 = arith.constant dense<0.000000e+00> : vector<8x128xf32>
    %271 = tpu.matmul %269, %270, %cst_105 {dimension_numbers = #tpu.dot_dimension_numbers<[1], [0], [0], [1], [0, 0, 1, 1], [], []>} : vector<8x32xbf16>, vector<32x128xbf16>, vector<8x128xf32> -> vector<8x128xf32>
    %272 = arith.addf %247, %271 : vector<8x128xf32>
    %273 = vector.extract_strided_slice %219 {offsets = [0, 64], sizes = [8, 32], strides = [1, 1]} : vector<8x384xf32> to vector<8x32xf32>
    %274 = arith.truncf %273 : vector<8x32xf32> to vector<8x32xbf16>
    %275 = vector.extract_strided_slice %219 {offsets = [0, 192], sizes = [8, 32], strides = [1, 1]} : vector<8x384xf32> to vector<8x32xf32>
    %276 = arith.truncf %275 : vector<8x32xf32> to vector<8x32xbf16>
    %277 = vector.extract_strided_slice %219 {offsets = [0, 320], sizes = [8, 32], strides = [1, 1]} : vector<8x384xf32> to vector<8x32xf32>
    %278 = arith.truncf %277 : vector<8x32xf32> to vector<8x32xbf16>
    %cst_106 = arith.constant dense<0.000000e+00> : vector<8x8xf32>
    %279 = tpu.matmul %274, %276, %cst_106 {dimension_numbers = #tpu.dot_dimension_numbers<[1], [1], [0], [0], [0, 0, 1, 0], [], []>} : vector<8x32xbf16>, vector<8x32xbf16>, vector<8x8xf32> -> vector<8x8xf32>
    %cst_107 = arith.constant 0.176776692 : f32
    %280 = vector.broadcast %cst_107 : f32 to vector<8x8xf32>
    %281 = arith.mulf %279, %280 : vector<8x8xf32>
    %cst_108 = arith.constant dense<0xFF800000> : vector<8xf32>
    %282 = vector.multi_reduction <maximumf>, %281, %cst_108 [1] : vector<8x8xf32> to vector<8xf32>
    %283 = vector.shape_cast %282 : vector<8xf32> to vector<8x1xf32>
    %284 = vector.broadcast %283 : vector<8x1xf32> to vector<8x8xf32>
    %285 = arith.subf %281, %284 : vector<8x8xf32>
    %286 = math.exp %285 : vector<8x8xf32>
    %cst_109 = arith.constant dense<0.000000e+00> : vector<8xf32>
    %287 = vector.multi_reduction <add>, %286, %cst_109 [1] : vector<8x8xf32> to vector<8xf32>
    %288 = vector.shape_cast %287 : vector<8xf32> to vector<8x1xf32>
    %289 = tpu.reciprocal %288 {approx = true} : vector<8x1xf32> -> vector<8x1xf32>
    %290 = vector.broadcast %289 : vector<8x1xf32> to vector<8x8xf32>
    %291 = arith.mulf %286, %290 : vector<8x8xf32>
    %292 = arith.truncf %291 : vector<8x8xf32> to vector<8x8xbf16>
    %cst_110 = arith.constant dense<0.000000e+00> : vector<8x32xf32>
    %293 = tpu.matmul %292, %278, %cst_110 {dimension_numbers = #tpu.dot_dimension_numbers<[1], [0], [0], [1], [0, 0, 1, 1], [], []>} : vector<8x8xbf16>, vector<8x32xbf16>, vector<8x32xf32> -> vector<8x32xf32>
    %294 = arith.truncf %293 : vector<8x32xf32> to vector<8x32xbf16>
    %295 = vector.extract_strided_slice %221 {offsets = [64, 0], sizes = [32, 128], strides = [1, 1]} : vector<128x128xbf16> to vector<32x128xbf16>
    %cst_111 = arith.constant dense<0.000000e+00> : vector<8x128xf32>
    %296 = tpu.matmul %294, %295, %cst_111 {dimension_numbers = #tpu.dot_dimension_numbers<[1], [0], [0], [1], [0, 0, 1, 1], [], []>} : vector<8x32xbf16>, vector<32x128xbf16>, vector<8x128xf32> -> vector<8x128xf32>
    %297 = arith.addf %272, %296 : vector<8x128xf32>
    %298 = vector.extract_strided_slice %219 {offsets = [0, 96], sizes = [8, 32], strides = [1, 1]} : vector<8x384xf32> to vector<8x32xf32>
    %299 = arith.truncf %298 : vector<8x32xf32> to vector<8x32xbf16>
    %300 = vector.extract_strided_slice %219 {offsets = [0, 224], sizes = [8, 32], strides = [1, 1]} : vector<8x384xf32> to vector<8x32xf32>
    %301 = arith.truncf %300 : vector<8x32xf32> to vector<8x32xbf16>
    %302 = vector.extract_strided_slice %219 {offsets = [0, 352], sizes = [8, 32], strides = [1, 1]} : vector<8x384xf32> to vector<8x32xf32>
    %303 = arith.truncf %302 : vector<8x32xf32> to vector<8x32xbf16>
    %cst_112 = arith.constant dense<0.000000e+00> : vector<8x8xf32>
    %304 = tpu.matmul %299, %301, %cst_112 {dimension_numbers = #tpu.dot_dimension_numbers<[1], [1], [0], [0], [0, 0, 1, 0], [], []>} : vector<8x32xbf16>, vector<8x32xbf16>, vector<8x8xf32> -> vector<8x8xf32>
    %cst_113 = arith.constant 0.176776692 : f32
    %305 = vector.broadcast %cst_113 : f32 to vector<8x8xf32>
    %306 = arith.mulf %304, %305 : vector<8x8xf32>
    %cst_114 = arith.constant dense<0xFF800000> : vector<8xf32>
    %307 = vector.multi_reduction <maximumf>, %306, %cst_114 [1] : vector<8x8xf32> to vector<8xf32>
    %308 = vector.shape_cast %307 : vector<8xf32> to vector<8x1xf32>
    %309 = vector.broadcast %308 : vector<8x1xf32> to vector<8x8xf32>
    %310 = arith.subf %306, %309 : vector<8x8xf32>
    %311 = math.exp %310 : vector<8x8xf32>
    %cst_115 = arith.constant dense<0.000000e+00> : vector<8xf32>
    %312 = vector.multi_reduction <add>, %311, %cst_115 [1] : vector<8x8xf32> to vector<8xf32>
    %313 = vector.shape_cast %312 : vector<8xf32> to vector<8x1xf32>
    %314 = tpu.reciprocal %313 {approx = true} : vector<8x1xf32> -> vector<8x1xf32>
    %315 = vector.broadcast %314 : vector<8x1xf32> to vector<8x8xf32>
    %316 = arith.mulf %311, %315 : vector<8x8xf32>
    %317 = arith.truncf %316 : vector<8x8xf32> to vector<8x8xbf16>
    %cst_116 = arith.constant dense<0.000000e+00> : vector<8x32xf32>
    %318 = tpu.matmul %317, %303, %cst_116 {dimension_numbers = #tpu.dot_dimension_numbers<[1], [0], [0], [1], [0, 0, 1, 1], [], []>} : vector<8x8xbf16>, vector<8x32xbf16>, vector<8x32xf32> -> vector<8x32xf32>
    %319 = arith.truncf %318 : vector<8x32xf32> to vector<8x32xbf16>
    %320 = vector.extract_strided_slice %221 {offsets = [96, 0], sizes = [32, 128], strides = [1, 1]} : vector<128x128xbf16> to vector<32x128xbf16>
    %cst_117 = arith.constant dense<0.000000e+00> : vector<8x128xf32>
    %321 = tpu.matmul %319, %320, %cst_117 {dimension_numbers = #tpu.dot_dimension_numbers<[1], [0], [0], [1], [0, 0, 1, 1], [], []>} : vector<8x32xbf16>, vector<32x128xbf16>, vector<8x128xf32> -> vector<8x128xf32>
    %322 = arith.addf %297, %321 : vector<8x128xf32>
    %323 = arith.addf %191, %322 : vector<8x128xf32>
    %c1_118 = arith.constant 1 : index
    %c0_119 = arith.constant 0 : index
    %c0_120 = arith.constant 0 : index
    %324 = vector.load %arg6[%c1_118, %c0_119, %c0_120] : memref<2x1x128xf32, #tpu.memory_space<vmem>>, vector<1x1x128xf32>
    %325 = vector.shape_cast %324 : vector<1x1x128xf32> to vector<1x128xf32>
    %326 = vector.broadcast %325 : vector<1x128xf32> to vector<8x128xf32>
    %327 = arith.addf %323, %326 : vector<8x128xf32>
    %c1_121 = arith.constant 1 : index
    %c0_122 = arith.constant 0 : index
    %c0_123 = arith.constant 0 : index
    %328 = vector.load %arg7[%c1_121, %c0_122, %c0_123] : memref<2x1x128xf32, #tpu.memory_space<vmem>>, vector<1x1x128xf32>
    %329 = vector.shape_cast %328 : vector<1x1x128xf32> to vector<1x128xf32>
    %c1_124 = arith.constant 1 : index
    %c0_125 = arith.constant 0 : index
    %c0_126 = arith.constant 0 : index
    %330 = vector.load %arg8[%c1_124, %c0_125, %c0_126] : memref<2x1x128xf32, #tpu.memory_space<vmem>>, vector<1x1x128xf32>
    %331 = vector.shape_cast %330 : vector<1x1x128xf32> to vector<1x128xf32>
    %cst_127 = arith.constant dense<0.000000e+00> : vector<8xf32>
    %332 = vector.multi_reduction <add>, %327, %cst_127 [1] : vector<8x128xf32> to vector<8xf32>
    %333 = vector.shape_cast %332 : vector<8xf32> to vector<8x1xf32>
    %cst_128 = arith.constant 1.280000e+02 : f32
    %334 = vector.broadcast %cst_128 : f32 to vector<8x1xf32>
    %335 = arith.divf %333, %334 : vector<8x1xf32>
    %336 = vector.broadcast %335 : vector<8x1xf32> to vector<8x128xf32>
    %337 = arith.subf %327, %336 : vector<8x128xf32>
    %338 = arith.mulf %337, %337 : vector<8x128xf32>
    %cst_129 = arith.constant dense<0.000000e+00> : vector<8xf32>
    %339 = vector.multi_reduction <add>, %338, %cst_129 [1] : vector<8x128xf32> to vector<8xf32>
    %340 = vector.shape_cast %339 : vector<8xf32> to vector<8x1xf32>
    %cst_130 = arith.constant 1.280000e+02 : f32
    %341 = vector.broadcast %cst_130 : f32 to vector<8x1xf32>
    %342 = arith.divf %340, %341 : vector<8x1xf32>
    %cst_131 = arith.constant 9.99999974E-6 : f32
    %343 = vector.broadcast %cst_131 : f32 to vector<8x1xf32>
    %344 = arith.addf %342, %343 : vector<8x1xf32>
    %345 = math.rsqrt %344 : vector<8x1xf32>
    %346 = vector.broadcast %345 : vector<8x1xf32> to vector<8x128xf32>
    %347 = arith.mulf %337, %346 : vector<8x128xf32>
    %348 = vector.broadcast %329 : vector<1x128xf32> to vector<8x128xf32>
    %349 = arith.mulf %347, %348 : vector<8x128xf32>
    %350 = vector.broadcast %331 : vector<1x128xf32> to vector<8x128xf32>
    %351 = arith.addf %349, %350 : vector<8x128xf32>
    %352 = arith.truncf %351 : vector<8x128xf32> to vector<8x128xbf16>
    %c1_132 = arith.constant 1 : index
    %c0_133 = arith.constant 0 : index
    %c0_134 = arith.constant 0 : index
    %353 = vector.load %arg9[%c1_132, %c0_133, %c0_134] : memref<2x128x256xbf16, #tpu.memory_space<vmem>>, vector<1x128x256xbf16>
    %354 = vector.shape_cast %353 : vector<1x128x256xbf16> to vector<128x256xbf16>
    %cst_135 = arith.constant dense<0.000000e+00> : vector<8x256xf32>
    %355 = tpu.matmul %352, %354, %cst_135 {dimension_numbers = #tpu.dot_dimension_numbers<[1], [0], [0], [1], [0, 0, 1, 1], [], []>} : vector<8x128xbf16>, vector<128x256xbf16>, vector<8x256xf32> -> vector<8x256xf32>
    %c1_136 = arith.constant 1 : index
    %c0_137 = arith.constant 0 : index
    %c0_138 = arith.constant 0 : index
    %356 = vector.load %arg10[%c1_136, %c0_137, %c0_138] : memref<2x1x256xf32, #tpu.memory_space<vmem>>, vector<1x1x256xf32>
    %357 = vector.shape_cast %356 : vector<1x1x256xf32> to vector<1x256xf32>
    %358 = vector.broadcast %357 : vector<1x256xf32> to vector<8x256xf32>
    %359 = arith.addf %355, %358 : vector<8x256xf32>
    %360 = arith.mulf %359, %359 : vector<8x256xf32>
    %361 = arith.mulf %359, %360 : vector<8x256xf32>
    %cst_139 = arith.constant 4.471500e-02 : f32
    %362 = vector.broadcast %cst_139 : f32 to vector<8x256xf32>
    %363 = arith.mulf %362, %361 : vector<8x256xf32>
    %364 = arith.addf %359, %363 : vector<8x256xf32>
    %cst_140 = arith.constant 0.797884583 : f32
    %365 = vector.broadcast %cst_140 : f32 to vector<8x256xf32>
    %366 = arith.mulf %365, %364 : vector<8x256xf32>
    %367 = math.tanh %366 : vector<8x256xf32>
    %cst_141 = arith.constant 1.000000e+00 : f32
    %368 = vector.broadcast %cst_141 : f32 to vector<8x256xf32>
    %369 = arith.addf %368, %367 : vector<8x256xf32>
    %cst_142 = arith.constant 5.000000e-01 : f32
    %370 = vector.broadcast %cst_142 : f32 to vector<8x256xf32>
    %371 = arith.mulf %370, %369 : vector<8x256xf32>
    %372 = arith.mulf %359, %371 : vector<8x256xf32>
    %373 = arith.truncf %372 : vector<8x256xf32> to vector<8x256xbf16>
    %c1_143 = arith.constant 1 : index
    %c0_144 = arith.constant 0 : index
    %c0_145 = arith.constant 0 : index
    %374 = vector.load %arg11[%c1_143, %c0_144, %c0_145] : memref<2x256x128xbf16, #tpu.memory_space<vmem>>, vector<1x256x128xbf16>
    %375 = vector.shape_cast %374 : vector<1x256x128xbf16> to vector<256x128xbf16>
    %cst_146 = arith.constant dense<0.000000e+00> : vector<8x128xf32>
    %376 = tpu.matmul %373, %375, %cst_146 {dimension_numbers = #tpu.dot_dimension_numbers<[1], [0], [0], [1], [0, 0, 1, 1], [], []>} : vector<8x256xbf16>, vector<256x128xbf16>, vector<8x128xf32> -> vector<8x128xf32>
    %377 = arith.addf %327, %376 : vector<8x128xf32>
    %c1_147 = arith.constant 1 : index
    %c0_148 = arith.constant 0 : index
    %c0_149 = arith.constant 0 : index
    %378 = vector.load %arg12[%c1_147, %c0_148, %c0_149] : memref<2x1x128xf32, #tpu.memory_space<vmem>>, vector<1x1x128xf32>
    %379 = vector.shape_cast %378 : vector<1x1x128xf32> to vector<1x128xf32>
    %380 = vector.broadcast %379 : vector<1x128xf32> to vector<8x128xf32>
    %381 = arith.addf %377, %380 : vector<8x128xf32>
    %c0_150 = arith.constant 0 : index
    %c0_151 = arith.constant 0 : index
    %c0_152 = arith.constant 0 : index
    %382 = vector.load %arg13[%c0_150, %c0_151, %c0_152] : memref<1x8x128xf32, #tpu.memory_space<vmem>>, vector<1x8x128xf32>
    %383 = vector.shape_cast %382 : vector<1x8x128xf32> to vector<8x128xf32>
    %384 = vector.shape_cast %381 : vector<8x128xf32> to vector<1x8x128xf32>
    tpu.vector_store %arg13[%c0_150, %c0_151, %c0_152], %384 {strides = array<i32>} : memref<1x8x128xf32, #tpu.memory_space<vmem>>, vector<1x8x128xf32>,
    return
  }
  func.func @transform_0(%arg0: i32) -> (i32, i32, i32) {
    %c0_i32 = arith.constant 0 : i32
    %c0_i32_0 = arith.constant 0 : i32
    %c0_i32_1 = arith.constant 0 : i32
    return %arg0, %c0_i32, %c0_i32_0 : i32, i32, i32
  }
  func.func @transform_1(%arg0: i32) -> (i32, i32, i32) {
    %c0_i32 = arith.constant 0 : i32
    %c0_i32_0 = arith.constant 0 : i32
    %c0_i32_1 = arith.constant 0 : i32
    %c0_i32_2 = arith.constant 0 : i32
    return %c0_i32, %c0_i32_0, %c0_i32_1 : i32, i32, i32
  }
  func.func @transform_2(%arg0: i32) -> (i32, i32, i32) {
    %c0_i32 = arith.constant 0 : i32
    %c0_i32_0 = arith.constant 0 : i32
    %c0_i32_1 = arith.constant 0 : i32
    %c0_i32_2 = arith.constant 0 : i32
    return %c0_i32, %c0_i32_0, %c0_i32_1 : i32, i32, i32
  }
  func.func @transform_3(%arg0: i32) -> (i32, i32, i32) {
    %c0_i32 = arith.constant 0 : i32
    %c0_i32_0 = arith.constant 0 : i32
    %c0_i32_1 = arith.constant 0 : i32
    %c0_i32_2 = arith.constant 0 : i32
    return %c0_i32, %c0_i32_0, %c0_i32_1 : i32, i32, i32
  }
  func.func @transform_4(%arg0: i32) -> (i32, i32, i32) {
    %c0_i32 = arith.constant 0 : i32
    %c0_i32_0 = arith.constant 0 : i32
    %c0_i32_1 = arith.constant 0 : i32
    %c0_i32_2 = arith.constant 0 : i32
    return %c0_i32, %c0_i32_0, %c0_i32_1 : i32, i32, i32
  }
  func.func @transform_5(%arg0: i32) -> (i32, i32, i32) {
    %c0_i32 = arith.constant 0 : i32
    %c0_i32_0 = arith.constant 0 : i32
    %c0_i32_1 = arith.constant 0 : i32
    %c0_i32_2 = arith.constant 0 : i32
    return %c0_i32, %c0_i32_0, %c0_i32_1 : i32, i32, i32
  }
  func.func @transform_6(%arg0: i32) -> (i32, i32, i32) {
    %c0_i32 = arith.constant 0 : i32
    %c0_i32_0 = arith.constant 0 : i32
    %c0_i32_1 = arith.constant 0 : i32
    %c0_i32_2 = arith.constant 0 : i32
    return %c0_i32, %c0_i32_0, %c0_i32_1 : i32, i32, i32
  }
  func.func @transform_7(%arg0: i32) -> (i32, i32, i32) {
    %c0_i32 = arith.constant 0 : i32
    %c0_i32_0 = arith.constant 0 : i32
    %c0_i32_1 = arith.constant 0 : i32
    %c0_i32_2 = arith.constant 0 : i32
    return %c0_i32, %c0_i32_0, %c0_i32_1 : i32, i32, i32
  }
  func.func @transform_8(%arg0: i32) -> (i32, i32, i32) {
    %c0_i32 = arith.constant 0 : i32
    %c0_i32_0 = arith.constant 0 : i32
    %c0_i32_1 = arith.constant 0 : i32
    %c0_i32_2 = arith.constant 0 : i32
    return %c0_i32, %c0_i32_0, %c0_i32_1 : i32, i32, i32
  }
  func.func @transform_9(%arg0: i32) -> (i32, i32, i32) {
    %c0_i32 = arith.constant 0 : i32
    %c0_i32_0 = arith.constant 0 : i32
    %c0_i32_1 = arith.constant 0 : i32
    %c0_i32_2 = arith.constant 0 : i32
    return %c0_i32, %c0_i32_0, %c0_i32_1 : i32, i32, i32
  }
  func.func @transform_10(%arg0: i32) -> (i32, i32, i32) {
    %c0_i32 = arith.constant 0 : i32
    %c0_i32_0 = arith.constant 0 : i32
    %c0_i32_1 = arith.constant 0 : i32
    %c0_i32_2 = arith.constant 0 : i32
    return %c0_i32, %c0_i32_0, %c0_i32_1 : i32, i32, i32
  }
  func.func @transform_11(%arg0: i32) -> (i32, i32, i32) {
    %c0_i32 = arith.constant 0 : i32
    %c0_i32_0 = arith.constant 0 : i32
    %c0_i32_1 = arith.constant 0 : i32
    %c0_i32_2 = arith.constant 0 : i32
    return %c0_i32, %c0_i32_0, %c0_i32_1 : i32, i32, i32
  }
  func.func @transform_12(%arg0: i32) -> (i32, i32, i32) {
    %c0_i32 = arith.constant 0 : i32
    %c0_i32_0 = arith.constant 0 : i32
    %c0_i32_1 = arith.constant 0 : i32
    return %arg0, %c0_i32, %c0_i32_0 : i32, i32, i32
  }
}

</mosaic_0001>

<bundles_post_ra>
// kernel: temporal_transformer_forward.1
= control target key start
LH: loop header
LB: loop body
LE: loop exit
PB: predicated region body
PF: predicated region fallthrough
CT: control target
= control target key end

     0   :  { %s4051_s21 = smov 0   ;;  %s4753_s0 = inlined_call_operand.vmem [shape: f32[2,8,128], index: 0, kind: input, shape index: {}]   ;;  %s4754_s1 = inlined_call_operand.vmem [shape: f32[2,1,128], index: 1, kind: input, shape index: {}]   ;;  %s4755_s2 = inlined_call_operand.vmem [shape: f32[2,1,128], index: 2, kind: input, shape index: {}]   ;;  %s4756_s3 = inlined_call_operand.vmem [shape: bf16[2,128,384], index: 3, kind: input, shape index: {}]   ;;  %s4757_s4 = inlined_call_operand.vmem [shape: bf16[2,128,128], index: 4, kind: input, shape index: {}]   ;;  %s4758_s5 = inlined_call_operand.vmem [shape: f32[2,1,128], index: 5, kind: input, shape index: {}]   ;;  %s4759_s6 = inlined_call_operand.vmem [shape: f32[2,1,128], index: 6, kind: input, shape index: {}]   ;;  %s4760_s7 = inlined_call_operand.vmem [shape: f32[2,1,128], index: 7, kind: input, shape index: {}]   ;;  %s4761_s8 = inlined_call_operand.vmem [shape: bf16[2,128,256], index: 8, kind: input, shape index: {}]   ;;  %s4762_s9 = inlined_call_operand.vmem [shape: f32[2,1,256], index: 9, kind: input, shape index: {}]   ;;  %s4763_s10 = inlined_call_operand.vmem [shape: bf16[2,256,128], index: 10, kind: input, shape index: {}]   ;;  %s4764_s11 = inlined_call_operand.vmem [shape: f32[2,1,128], index: 11, kind: input, shape index: {}]   ;;  %s4765_s12 = inlined_call_operand.vmem [shape: f32[2,8,128], index: 12, kind: output, shape index: {}]  }
   0x1 LB: > { %s3156_s22 = sadd.s32 4294967295, %s3978_s21   ;;  %p3160_p0 = scmp.ge.s32.totalorder %s3978_s21, 1  ;;  %s3978_s21 = sphi %s4051_s21, %s22_s21  }
   0x2   : > { %p361_p1 = scmp.lt.s32.totalorder %s3978_s21, 3 }
   0x4   : > { %p362_p2 = pnand %p3160_p0, %p361_p1 }
   0x5   : > { %p401_p3 = scmp.lt.s32.totalorder (!%p362_p2), %s3156_s22, 1  ;;  %v3764_v1 = vld [vmem:[%s4756_s3 + $0x4] ss:$12 sps:$4 sm:$0xff] (!%p362_p2)   ;;  %v3766_v2 = vld [vmem:[%s4756_s3] ss:$12 sps:$4 sm:$0xff] (!%p362_p2)   ;;  %v3980_v3 = vmov (!%p362_p2), 0.0  }
   0x6   : > { %365 = sbr.rel (%p362_p2) target bundleno = 7378 (0x1cd2), region = 68  ;;  %3550 = vmatprep.subr.bf16.mxu1 (!%p362_p2), %v3980_v3  ;;  %v3767_v4 = vld [vmem:[%s4756_s3 + $0x8] ss:$12 sps:$4 sm:$0xff] (!%p362_p2)   ;;  %v3770_v6 = vld [vmem:[%s4756_s3 + $0x18] ss:$12 sps:$4 sm:$0xff] (!%p362_p2)   ;;  %600 = vmatprep.subr.bf16.mxu0 (!%p362_p2), %v3764_v1  ;;  %v3981_v25 = vmov (!%p362_p2), 0  }
   0x7   : > { %v3768_v5 = vld [vmem:[%s4756_s3 + $0x1c] ss:$12 sps:$4 sm:$0xff] (!%p362_p2)   ;;  %v3771_v7 = vld [vmem:[%s4756_s3 + $0x20] ss:$12 sps:$4 sm:$0xff] (!%p362_p2)   ;;  %601 = vmatpush1.bf16.msra.mxu0 (!%p362_p2), %v3766_v2  ;;  %3551 = vmatpush3.bf16.msra.mxu1 (!%p362_p2), %v3767_v4  ;;  %v3775_v14 = vld [vmem:[%s4756_s3 + $0x38] ss:$12 sps:$4 sm:$0xff] (!%p362_p2)  }
   0x8   : > { %v3772_v8 = vld [vmem:[%s4756_s3 + $0x34] ss:$12 sps:$4 sm:$0xff] (!%p362_p2)   ;;  %602 = vmatprep.subr.bf16.mxu0 (!%p362_p2), %v3768_v5  ;;  %3552 = vmatprep.subr.bf16.mxu1 (!%p362_p2), %v3980_v3  ;;  %v3774_v13 = vld [vmem:[%s4756_s3 + $0x30] ss:$12 sps:$4 sm:$0xff] (!%p362_p2)   ;;  %v3776_v15 = vld [vmem:[%s4756_s3 + $0x4c] ss:$12 sps:$4 sm:$0xff] (!%p362_p2)  }
   0x9   : > { %v3778_v16 = vld [vmem:[%s4756_s3 + $0x48] ss:$12 sps:$4 sm:$0xff] (!%p362_p2)   ;;  %v3779_v17 = vld [vmem:[%s4756_s3 + $0x50] ss:$12 sps:$4 sm:$0xff] (!%p362_p2)   ;;  %v3782_v19 = vld [vmem:[%s4756_s3 + $0x60] ss:$12 sps:$4 sm:$0xff] (!%p362_p2)   ;;  %632 = vmatprep.mubr.bf16.mxu0 (!%p362_p2), %v3981_v25 }
   0xa   : > { %v3780_v18 = vld [vmem:[%s4756_s3 + $0x64] ss:$12 sps:$4 sm:$0xff] (!%p362_p2)   ;;  %v3783_v20 = vld [vmem:[%s4756_s3 + $0x68] ss:$12 sps:$4 sm:$0xff] (!%p362_p2)   ;;  %v3787_v23 = vld [vmem:[%s4756_s3 + $0x80] ss:$12 sps:$4 sm:$0xff] (!%p362_p2)  }
   0xb   : > { %603 = vmatpush1.bf16.msra.mxu0 (!%p362_p2), %v3770_v6  ;;  %3553 = vmatpush3.bf16.msra.mxu1 (!%p362_p2), %v3771_v7  ;;  %v3784_v21 = vld [vmem:[%s4756_s3 + $0x7c] ss:$12 sps:$4 sm:$0xff] (!%p362_p2)   ;;  %v3786_v22 = vld [vmem:[%s4756_s3 + $0x78] ss:$12 sps:$4 sm:$0xff] (!%p362_p2)   ;;  %v3788_v24 = vld [vmem:[%s4756_s3 + $0x94] ss:$12 sps:$4 sm:$0xff] (!%p362_p2)  }
   0xc   : > { %604 = vmatprep.subr.bf16.mxu0 (!%p362_p2), %v3772_v8  ;;  %3554 = vmatprep.subr.bf16.mxu1 (!%p362_p2), %v3980_v3  ;;  %vm3982_vm0 = vmmov (!%p362_p2), 0   ;;  %v3790_v26 = vld [vmem:[%s4756_s3 + $0x90] ss:$12 sps:$4 sm:$0xff] (!%p362_p2)   ;;  %v3791_v27 = vld [vmem:[%s4756_s3 + $0x98] ss:$12 sps:$4 sm:$0xff] (!%p362_p2)   ;;  %vm764_vm1 = vcmask (!%p362_p2), 1043456  }
   0xd   : > { %s4767_s22 = smov (!%p401_p3, %s3156_s22), 1  ;;  %3566 = vmatprep.mubr.msk.bf16.mxu1 %vm3982_vm0, %v3980_v3  ;;  %v3792_v28 = vld [vmem:[%s4756_s3 + $0xac] ss:$12 sps:$4 sm:$0xff]   ;;  %v3794_v29 = vld [vmem:[%s4756_s3 + $0xa8] ss:$12 sps:$4 sm:$0xff]   ;;  %vm700_vm2 = vcmask 261120  }
   0xe   : > { %s3161_s23 = sshll.u32 %s4767_s22, 3  ;;  %v3795_v30 = vld [vmem:[%s4756_s3 + $0xb0] ss:$12 sps:$4 sm:$0xff]   ;;  %v3163_v35 = vld [vmem:[%s4754_s1] ss:$0 sm:$0xff]  ;;  %s3983_s16 = smov 96  }
   0xf   : > { %s404_s26 = scalar_lea.vmem %s4753_s0, %s3161_s23  ;;  %605 = vmatpush1.bf16.msra.mxu0 %v3774_v13  ;;  %3555 = vmatpush3.bf16.msra.mxu1 %v3775_v14  ;;  %v3164_v37 = vld [vmem:[%s4755_s2] ss:$0 sm:$0xff]  ;;  %vm748_vm3 = vcmask 64512   ;;  %s3984_s17 = smov 64  }
  0x10   : > { %v4067_v0 = vld [vmem:[%s404_s26] sm:$0xff]  ;;  %3556 = vmatprep.subr.bf16.mxu1 %v3980_v3  ;;  %606 = vmatprep.subr.bf16.mxu0 %v3776_v15  ;;  %s3985_s29 = smov 32   ;;  %s408_s18 = scalar_lea.vmem %s4765_s12, %s3161_s23 }
  0x11   : > { %413 = vadd.xlane.f32.xlu0 %v4067_v0 }
  0x13   : > { %607 = vmatpush1.bf16.msra.mxu0 %v3778_v16  ;;  %3557 = vmatpush3.bf16.msra.mxu1 %v3779_v17 }
  0x14   : > { %3558 = vmatprep.subr.bf16.mxu1 %v3980_v3  ;;  %608 = vmatprep.subr.bf16.mxu0 %v3780_v18 }
  0x17   : > { %609 = vmatpush1.bf16.msra.mxu0 %v3782_v19  ;;  %3559 = vmatpush3.bf16.msra.mxu1 %v3783_v20 }
  0x18   : > { %610 = vmatprep.subr.bf16.mxu0 %v3784_v21  ;;  %3560 = vmatprep.subr.bf16.mxu1 %v3980_v3  ;;  %v3798_v21 = vld [vmem:[%s4757_s4 + $0x10] sm:$0xff]  }
  0x1b   : > { %611 = vmatpush1.bf16.msra.mxu0 %v3786_v22  ;;  %3561 = vmatpush3.bf16.msra.mxu1 %v3787_v23  ;;  %v3799_v22 = vld [vmem:[%s4757_s4 + $0x18] sm:$0xff]  }
  0x1c   : > { %612 = vmatprep.subr.bf16.mxu0 %v3788_v24  ;;  %3562 = vmatprep.subr.bf16.mxu1 %v3980_v3 }
  0x1f   : > { %613 = vmatpush1.bf16.msra.mxu0 %v3790_v26  ;;  %3563 = vmatpush3.bf16.msra.mxu1 %v3791_v27 }
  0x20   : > { %614 = vmatprep.subr.bf16.mxu0 %v3792_v28  ;;  %3564 = vmatprep.subr.bf16.mxu1 %v3980_v3 }
  0x23   : > { %615 = vmatpush1.bf16.msra.mxu0 %v3794_v29  ;;  %3565 = vmatpush3.bf16.msra.mxu1 %v3795_v30  ;;  %v3796_v29 = vld [vmem:[%s4757_s4] sm:$0xff]  }
  0x24   : > { %3576 = vmatprep.subr.bf16.mxu1 %v3980_v3  ;;  %3570 = vmatprep.subr.bf16.mxu0 %v3980_v3 }
  0x9e   : > { %v414_v9 = vpop.xlane.xlu0 %413 }
  0x9f   : > { %v416_v10 = vmul.f32 0.0078125, %v414_v9 }
  0xa1   : > { %v417_v11 = vsub.f32 %v4067_v0, %v416_v10 }
  0xa3   : > { %v418_v12 = vmul.f32 %v417_v11, %v417_v11 }
  0xa5   : > { %419 = vadd.xlane.f32.xlu0 %v418_v12 }
 0x132   : > { %v420_v31 = vpop.xlane.xlu0 %419 }
 0x133   : > { %v421_v32 = vmul.f32 0.0078125, %v420_v31  ;;  %v3797_v31 = vld [vmem:[%s4757_s4 + $0x8] sm:$0xff]  }
 0x135   : > { %v422_v33 = vadd.f32 1e-05, %v421_v32 }
 0x137   : > { %3924 = vrsqrt.f32 %v422_v33 }
 0x141   : > { %v3925_v34 = vpop.eup %3924 }
 0x142   : > { %v424_v36 = vmul.f32 %v3925_v34, %v417_v11 }
 0x144   : > { %v431_v38 = vmul.f32 %v3163_v35, %v424_v36 }
 0x146   : > { %v438_v39 = vadd.f32 %v3164_v37, %v431_v38 }
 0x148   : > { %v439_v40 = vpack.c.bf16 %v438_v39, %v438_v39 }
 0x14a   : > { %633 = vmatmul.mubr.bf16.vlgmr.msra.gmra.mrb[0].mxu0 %v439_v40  ;;  %3567 = vmatmul.mubr.bf16.vlgmr.msra.gmra.mrb[0].mxu1 %v439_v40 }
 0x14b   : > { %3572 = vmatprep.mubr.msk.bf16.mxu0 %vm3982_vm0, %v3980_v3  ;;  %3578 = vmatprep.mubr.msk.bf16.mxu1 %vm3982_vm0, %v3980_v3 }
 0x21d   : > { %v634_v41 = vpop.f32.mrb[0].mxu0  ;;  %v675_v42 = vpop.f32.mrb[0].mxu1 }
 0x21e   : > { %v4166_v43 = vpack.c.bf16 %v675_v42, %v675_v42  ;;  %v636_v44 = vpop.f32.mrb[1].mxu0  ;;  %v3568_v45 = vpop.f32.mrb[1].mxu1  ;;  %v4177_v53 = vpack.c.bf16 %v634_v41, %v634_v41 }
 0x21f   : > { %v4168_v46 = vpack.c.bf16 %v636_v44, %v636_v44  ;;  %v638_v47 = vpop.f32.mrb[2].mxu0  ;;  %v678_v48 = vpop.f32.mrb[2].mxu1 }
 0x220   : > { %v639_v49 = vpop.f32.mrb[3].mxu0  ;;  %v3569_v50 = vpop.f32.mrb[3].mxu1  ;;  %v766_v51 = vsel %vm764_vm1, %v4166_v43, 0 }
 0x221   : > { %3577 = vmatpush3.bf16.msra.mxu1 %v766_v51  ;;  %813 = vrot.lane.b32.xlu1 %v4168_v46, %s3983_s16  ;;  %v705_v52 = vsel %vm700_vm2, %v4168_v46, 0 }
 0x222   : > { %3571 = vmatpush3.bf16.xpose.msra.mxu0 %v705_v52  ;;  %3588 = vmatprep.subr.bf16.mxu1 %v3980_v3 }
 0x223   : > { %3582 = vmatprep.subr.bf16.mxu0 %v3980_v3 }
 0x225   : > { %810 = vrot.lane.b32.xlu1 %v4177_v53, %s3983_s16 }
 0x229   : > { %3573 = vmatmul.mubr.msk.bf16.vlgmr.msra.gmra.mrb[4].mxu0 %vm700_vm2, %v4177_v53 }
 0x22a   : > { %3584 = vmatprep.mubr.msk.bf16.mxu0 %vm3982_vm0, %v3980_v3 }
 0x293   : > { %v814_v54 = vpop.permute.xlu1 %813 }
 0x294   : > { %v819_v55 = vsel %vm700_vm2, %v814_v54, 0 }
 0x295   : > { %3583 = vmatpush3.bf16.xpose.msra.mxu0 %v819_v55 }
 0x296   : > { %3594 = vmatprep.subr.bf16.mxu0 %v3980_v3 }
 0x297   : > { %v811_v56 = vpop.permute.xlu1 %810 }
 0x29c   : > { %3585 = vmatmul.mubr.msk.bf16.vlgmr.msra.gmra.mrb[8].mxu0 %vm700_vm2, %v811_v56 }
 0x29d   : > { %3598 = vmatprep.mubr.msk.bf16.mxu0 %vm3982_vm0, %v3980_v3  ;;  %3595 = vmatpush3.bf16.msra.mxu0 %v3798_v21 }
 0x29e   : > { %3596 = vmatprep.subr.bf16.mxu0 %v3980_v3 }
 0x2a1   : > { %3597 = vmatpush3.bf16.msra.mxu0 %v3799_v22 }
 0x2a2   : > { %3610 = vmatprep.subr.bf16.mxu0 %v3980_v3 }
 0x2fc   : > { %v741_v57 = vpop.f32.mrb[4].mxu0 }
 0x2fd   : > { %v747_v58 = vmul.f32 0.17677669, %v741_v57  ;;  %v3574_v59 = vpop.f32.mrb[5].mxu0 }
 0x2fe   : > { %v744_v60 = vpop.f32.mrb[6].mxu0 }
 0x2ff   : > { %v3575_v61 = vpop.f32.mrb[7].mxu0  ;;  %v749_v62 = vsel %vm748_vm3, %v747_v58, -inf }
 0x300   : > { %750 = vmax.xlane.f32.xlu0 %v749_v62 }
 0x36f   : > { %v855_v63 = vpop.f32.mrb[8].mxu0 }
 0x370   : > { %v861_v1 = vmul.f32 0.17677669, %v855_v63  ;;  %v3586_v2 = vpop.f32.mrb[9].mxu0 }
 0x371   : > { %v858_v4 = vpop.f32.mrb[10].mxu0 }
 0x372   : > { %v3587_v5 = vpop.f32.mrb[11].mxu0  ;;  %v862_v6 = vsel %vm748_vm3, %v861_v1, -inf }
 0x373   : > { %863 = vmax.xlane.f32.xlu1 %v862_v6 }
 0x384   : > { %1034 = vrot.lane.b32.xlu1 %v4177_v53, %s3984_s17 }
 0x38d   : > { %v751_v7 = vpop.xlane.xlu0 %750 }
 0x38e   : > { %v752_v8 = vsub.f32 %v747_v58, %v751_v7 }
 0x390   : > { %v753_v9 = vmul.f32 1.442695, %v752_v8 }
 0x392   : > { %3926 = vpow2.f32 %v753_v9 }
 0x39c   : > { %v3927_v10 = vpop.eup %3926 }
 0x39d   : > { %v755_v11 = vsel %vm748_vm3, %v3927_v10, 0.0 }
 0x39e   : > { %756 = vadd.xlane.f32.xlu0 %v755_v11 }
 0x400   : > { %v864_v12 = vpop.xlane.xlu1 %863 }
 0x401   : > { %v865_v13 = vsub.f32 %v861_v1, %v864_v12 }
 0x403   : > { %v866_v14 = vmul.f32 1.442695, %v865_v13 }
 0x404   : > { %v1035_v45 = vpop.permute.xlu1 %1034 }
 0x405   : > { %3928 = vpow2.f32 %v866_v14  ;;  %v3801_v14 = vld [vmem:[%s4757_s4 + $0x28] sm:$0xff]  }
 0x40f   : > { %v3929_v15 = vpop.eup %3928 }
 0x410   : > { %v868_v16 = vsel %vm748_vm3, %v3929_v15, 0.0 }
 0x411   : > { %869 = vadd.xlane.f32.xlu0 %v868_v16 }
 0x427   : > { %875 = vrot.lane.b32.xlu0 %v4166_v43, %s3983_s16 }
 0x42b   : > { %v757_v17 = vpop.xlane.xlu0 %756  ;;  %1036 = vrot.lane.b32.xlu0 %v4168_v46, %s3984_s17 }
 0x42c   : > { %3930 = vrcp.f32 %v757_v17 }
 0x436   : > { %v3931_v18 = vpop.eup %3930 }
 0x437   : > { %v759_v19 = vmul.f32 %v3931_v18, %v3927_v10 }
 0x439   : > { %v760_v20 = vpack.c.bf16 %v759_v19, %v759_v19 }
 0x43b   : > { %3579 = vmatmul.mubr.msk.bf16.vlgmr.msra.gmra.mrb[4].mxu1 %vm748_vm3, %v760_v20 }
 0x43c   : > { %3590 = vmatprep.mubr.msk.bf16.mxu1 %vm3982_vm0, %v3980_v3 }
 0x49e   : > { %v870_v23 = vpop.xlane.xlu0 %869 }
 0x49f   : > { %3932 = vrcp.f32 %v870_v23 }
 0x4a2   : > { %v876_v24 = vpop.permute.xlu0 %875 }
 0x4a3   : > { %v881_v26 = vsel %vm764_vm1, %v876_v24, 0 }
 0x4a4   : > { %3589 = vmatpush3.bf16.msra.mxu1 %v881_v26 }
 0x4a5   : > { %3602 = vmatprep.subr.bf16.mxu1 %v3980_v3 }
 0x4a6   : > { %v1037_v37 = vpop.permute.xlu0 %1036 }
 0x4a7   : > { %v1042_v42 = vsel %vm700_vm2, %v1037_v37, 0 }
 0x4a9   : > { %v3933_v27 = vpop.eup %3932 }
 0x4aa   : > { %v872_v28 = vmul.f32 %v3933_v27, %v3929_v15 }
 0x4ac   : > { %v873_v30 = vpack.c.bf16 %v872_v28, %v872_v28 }
 0x4ae   : > { %3591 = vmatmul.mubr.msk.bf16.vlgmr.msra.gmra.mrb[8].mxu1 %vm748_vm3, %v873_v30 }
 0x4af   : > { %3603 = vmatpush3.bf16.msra.mxu1 %v3796_v29  ;;  %3606 = vmatprep.mubr.msk.bf16.mxu1 %vm3982_vm0, %v3980_v3 }
 0x4b0   : > { %3604 = vmatprep.subr.bf16.mxu1 %v3980_v3 }
 0x4b3   : > { %3605 = vmatpush3.bf16.msra.mxu1 %v3797_v31 }
 0x4b4   : > { %3616 = vmatprep.subr.bf16.mxu1 %v3980_v3 }
 0x50e   : > { %v802_v32 = vpop.f32.mrb[4].mxu1 }
 0x50f   : > { %v808_v33 = vpack.c.bf16 %v802_v32, %v802_v32  ;;  %v3580_v34 = vpop.f32.mrb[5].mxu1 }
 0x510   : > { %v805_v35 = vpop.f32.mrb[6].mxu1  ;;  %v3802_v34 = vld [vmem:[%s4757_s4 + $0x30] sm:$0xff]  }
 0x511   : > { %v3581_v36 = vpop.f32.mrb[7].mxu1  ;;  %3607 = vmatmul.mubr.msk.bf16.vlgmr.msra.gmra.mrb[12].mxu1 %vm700_vm2, %v808_v33 }
 0x512   : > { %3618 = vmatprep.mubr.msk.bf16.mxu1 %vm3982_vm0, %v3980_v3 }
 0x581   : > { %v917_v38 = vpop.f32.mrb[8].mxu1 }
 0x582   : > { %v923_v39 = vpack.c.bf16 %v917_v38, %v917_v38  ;;  %v3592_v40 = vpop.f32.mrb[9].mxu1 }
 0x583   : > { %v920_v41 = vpop.f32.mrb[10].mxu1 }
 0x584   : > { %v3593_v44 = vpop.f32.mrb[11].mxu1  ;;  %3599 = vmatmul.mubr.msk.bf16.vlgmr.msra.gmra.mrb[12].mxu0 %vm700_vm2, %v923_v39 }
 0x585   : > { %3611 = vmatpush3.bf16.xpose.msra.mxu0 %v1042_v42  ;;  %3612 = vmatprep.mubr.msk.bf16.mxu0 %vm3982_vm0, %v3980_v3  ;;  %v3803_v44 = vld [vmem:[%s4757_s4 + $0x38] sm:$0xff]  }
 0x586   : > { %3622 = vmatprep.subr.bf16.mxu0 %v3980_v3 }
 0x58c   : > { %3613 = vmatmul.mubr.msk.bf16.vlgmr.msra.gmra.mrb[16].mxu0 %vm700_vm2, %v1035_v45 }
 0x58d   : > { %3626 = vmatprep.mubr.msk.bf16.mxu0 %vm3982_vm0, %v3980_v3 }
 0x5e4   : > { %v1028_v47 = vpop.f32.mrb[12].mxu1 }
 0x5e5   : > { %v3608_v48 = vpop.f32.mrb[13].mxu1 }
 0x5e6   : > { %v1031_v49 = vpop.f32.mrb[14].mxu1 }
 0x5e7   : > { %v3609_v50 = vpop.f32.mrb[15].mxu1 }
 0x657   : > { %v973_v51 = vpop.f32.mrb[12].mxu0 }
 0x658   : > { %v4236_v52 = vadd.f32 %v1028_v47, %v973_v51  ;;  %v3600_v54 = vpop.f32.mrb[13].mxu0 }
 0x659   : > { %v976_v55 = vpop.f32.mrb[14].mxu0 }
 0x65a   : > { %v3601_v56 = vpop.f32.mrb[15].mxu0 }
 0x65b   : > { %v3209_v56 = vld [vmem:[%s4758_s5] ss:$0 sm:$0xff] }
 0x65f   : > { %v1078_v57 = vpop.f32.mrb[16].mxu0 }
 0x660   : > { %v1084_v58 = vmul.f32 0.17677669, %v1078_v57  ;;  %v3614_v59 = vpop.f32.mrb[17].mxu0 }
 0x661   : > { %v1081_v60 = vpop.f32.mrb[18].mxu0 }
 0x662   : > { %v3615_v61 = vpop.f32.mrb[19].mxu0  ;;  %v1085_v62 = vsel %vm748_vm3, %v1084_v58, -inf  ;;  %v3804_v60 = vld [vmem:[%s4761_s8] ss:$8 sps:$4 sm:$0xff]  }
 0x663   : > { %1086 = vmax.xlane.f32.xlu0 %v1085_v62  ;;  %v3806_v61 = vld [vmem:[%s4761_s8 + $0x4] ss:$8 sps:$4 sm:$0xff]   ;;  %v3809_v62 = vld [vmem:[%s4761_s8 + $0x14] ss:$8 sps:$4 sm:$0xff]  }
 0x679   : > { %1097 = vrot.lane.b32.xlu0 %v4166_v43, %s3984_s17 }
 0x67d   : > { %1202 = vrot.lane.b32.xlu0 %v4177_v53, %s3985_s29  ;;  %v3800_v53 = vld [vmem:[%s4757_s4 + $0x20] sm:$0xff]  }
 0x67e   : > { %3623 = vmatpush3.bf16.msra.mxu0 %v3800_v53  ;;  %v3813_v53 = vld [vmem:[%s4761_s8 + $0x30] ss:$8 sps:$4 sm:$0xff]  }
 0x67f   : > { %3624 = vmatprep.subr.bf16.mxu0 %v3980_v3 }
 0x682   : > { %3625 = vmatpush3.bf16.msra.mxu0 %v3801_v14  ;;  %v3825_v14 = vld [vmem:[%s4761_s8 + $0x70] ss:$8 sps:$4 sm:$0xff]  }
 0x683   : > { %3636 = vmatprep.subr.bf16.mxu0 %v3980_v3 }
 0x6f0   : > { %v1087_v63 = vpop.xlane.xlu0 %1086 }
 0x6f1   : > { %v1088_v1 = vsub.f32 %v1084_v58, %v1087_v63  ;;  %v3812_v63 = vld [vmem:[%s4761_s8 + $0x24] ss:$8 sps:$4 sm:$0xff]  }
 0x6f3   : > { %v1089_v2 = vmul.f32 1.442695, %v1088_v1  ;;  %v3810_v1 = vld [vmem:[%s4761_s8 + $0x20] ss:$8 sps:$4 sm:$0xff]  }
 0x6f4   : > { %v1098_v4 = vpop.permute.xlu0 %1097 }
 0x6f5   : > { %3934 = vpow2.f32 %v1089_v2  ;;  %v1103_v5 = vsel %vm764_vm1, %v1098_v4, 0 }
 0x6f6   : > { %3617 = vmatpush3.bf16.msra.mxu1 %v1103_v5 }
 0x6f7   : > { %3630 = vmatprep.subr.bf16.mxu1 %v3980_v3 }
 0x6ff   : > { %v3935_v6 = vpop.eup %3934 }
 0x700   : > { %v1091_v7 = vsel %vm748_vm3, %v3935_v6, 0.0 }
 0x701   : > { %1092 = vadd.xlane.f32.xlu1 %v1091_v7  ;;  %v3815_v7 = vld [vmem:[%s4761_s8 + $0x34] ss:$8 sps:$4 sm:$0xff]  }
 0x712   : > { %1204 = vrot.lane.b32.xlu1 %v4168_v46, %s3985_s29  ;;  %v1203_v46 = vpop.permute.xlu0 %1202 }
 0x78e   : > { %v1093_v8 = vpop.xlane.xlu1 %1092 }
 0x78f   : > { %3936 = vrcp.f32 %v1093_v8  ;;  %v3818_v8 = vld [vmem:[%s4761_s8 + $0x44] ss:$8 sps:$4 sm:$0xff]  }
 0x792   : > { %v1205_v11 = vpop.permute.xlu1 %1204 }
 0x793   : > { %v1210_v13 = vsel %vm700_vm2, %v1205_v11, 0  ;;  %v3819_v11 = vld [vmem:[%s4761_s8 + $0x50] ss:$8 sps:$4 sm:$0xff]  }
 0x799   : > { %v3937_v9 = vpop.eup %3936 }
 0x79a   : > { %v1095_v10 = vmul.f32 %v3937_v9, %v3935_v6  ;;  %v3816_v9 = vld [vmem:[%s4761_s8 + $0x40] ss:$8 sps:$4 sm:$0xff]  }
 0x79c   : > { %v1096_v12 = vpack.c.bf16 %v1095_v10, %v1095_v10  ;;  %v3821_v10 = vld [vmem:[%s4761_s8 + $0x54] ss:$8 sps:$4 sm:$0xff]  }
 0x79e   : > { %3619 = vmatmul.mubr.msk.bf16.vlgmr.msra.gmra.mrb[16].mxu1 %vm748_vm3, %v1096_v12  ;;  %v3824_v12 = vld [vmem:[%s4761_s8 + $0x64] ss:$8 sps:$4 sm:$0xff]  }
 0x79f   : > { %3631 = vmatpush3.bf16.xpose.msra.mxu1 %v1210_v13  ;;  %3632 = vmatprep.mubr.msk.bf16.mxu1 %vm3982_vm0, %v3980_v3  ;;  %v3822_v13 = vld [vmem:[%s4761_s8 + $0x60] ss:$8 sps:$4 sm:$0xff]  }
 0x7a0   : > { %3642 = vmatprep.subr.bf16.mxu1 %v3980_v3 }
 0x7a6   : > { %3633 = vmatmul.mubr.msk.bf16.vlgmr.msra.gmra.mrb[20].mxu1 %vm700_vm2, %v1203_v46  ;;  %v3827_v46 = vld [vmem:[%s4761_s8 + $0x74] ss:$8 sps:$4 sm:$0xff]  }
 0x7a7   : > { %3646 = vmatprep.mubr.msk.bf16.mxu1 %vm3982_vm0, %v3980_v3  ;;  %3643 = vmatpush3.bf16.msra.mxu1 %v3802_v34  ;;  %v3836_v34 = vld [vmem:[%s4763_s10 + $0x60] sm:$0xff]  }
 0x7a8   : > { %3644 = vmatprep.subr.bf16.mxu1 %v3980_v3 }
 0x7ab   : > { %3645 = vmatpush3.bf16.msra.mxu1 %v3803_v44 }
 0x871   : > { %v1139_v15 = vpop.f32.mrb[16].mxu1 }
 0x872   : > { %v1145_v16 = vpack.c.bf16 %v1139_v15, %v1139_v15  ;;  %v3620_v17 = vpop.f32.mrb[17].mxu1 }
 0x873   : > { %v1142_v18 = vpop.f32.mrb[18].mxu1 }
 0x874   : > { %v3621_v19 = vpop.f32.mrb[19].mxu1  ;;  %3627 = vmatmul.mubr.msk.bf16.vlgmr.msra.gmra.mrb[20].mxu0 %vm700_vm2, %v1145_v16 }
 0x875   : > { %3638 = vmatprep.mubr.msk.bf16.mxu0 %vm3982_vm0, %v3980_v3  ;;  %v3210_v19 = vld [vmem:[%s4759_s6] ss:$0 sm:$0xff] }
 0x879   : > { %v1246_v20 = vpop.f32.mrb[20].mxu1 }
 0x87a   : > { %v1252_v21 = vmul.f32 0.17677669, %v1246_v20  ;;  %v3634_v22 = vpop.f32.mrb[21].mxu1 }
 0x87b   : > { %v1249_v23 = vpop.f32.mrb[22].mxu1 }
 0x87c   : > { %v3635_v24 = vpop.f32.mrb[23].mxu1  ;;  %v1253_v26 = vsel %vm748_vm3, %v1252_v21, -inf }
 0x87d   : > { %1254 = vmax.xlane.f32.xlu0 %v1253_v26  ;;  %v3828_v26 = vld [vmem:[%s4763_s10 + $0x40] sm:$0xff]  }
 0x87e   : > { %3469 = vmatprep.subr.bf16.mxu1 %v3828_v26  ;;  %v3848_v26 = vld [vmem:[%s4756_s3 + $0xd8] ss:$12 sps:$4 sm:$0xff]  }
 0x893   : > { %1265 = vrot.lane.b32.xlu0 %v4166_v43, %s3985_s29 }
 0x90a   : > { %v1255_v27 = vpop.xlane.xlu0 %1254 }
 0x90b   : > { %v1256_v28 = vsub.f32 %v1252_v21, %v1255_v27  ;;  %v3211_v21 = vld [vmem:[%s4760_s7] ss:$0 sm:$0xff] }
 0x90c   : > { %v3829_v27 = vld [vmem:[%s4763_s10] sm:$0xff]  }
 0x90d   : > { %v1257_v29 = vmul.f32 1.442695, %v1256_v28  ;;  %v3830_v28 = vld [vmem:[%s4763_s10 + $0x48] sm:$0xff]  }
 0x90e   : > { %v1266_v30 = vpop.permute.xlu0 %1265 }
 0x90f   : > { %3938 = vpow2.f32 %v1257_v29  ;;  %v1271_v31 = vsel %vm764_vm1, %v1266_v30, 0  ;;  %v3831_v29 = vld [vmem:[%s4763_s10 + $0x8] sm:$0xff]   ;;  %v3832_v30 = vld [vmem:[%s4763_s10 + $0x50] sm:$0xff]  }
 0x910   : > { %3637 = vmatpush3.bf16.msra.mxu0 %v1271_v31  ;;  %v3833_v31 = vld [vmem:[%s4763_s10 + $0x10] sm:$0xff]  }
 0x911   : > { %1515 = vmatprep.subr.bf16.mxu0 %v3806_v61 }
 0x919   : > { %v3939_v32 = vpop.eup %3938 }
 0x91a   : > { %v1259_v33 = vsel %vm748_vm3, %v3939_v32, 0.0 }
 0x91b   : > { %1260 = vadd.xlane.f32.xlu1 %v1259_v33  ;;  %v3835_v33 = vld [vmem:[%s4763_s10 + $0x18] sm:$0xff]  }
 0x947   : > { %v1195_v43 = vpop.f32.mrb[20].mxu0 }
 0x948   : > { %v1201_v35 = vadd.f32 %v1195_v43, %v4236_v52  ;;  %v3628_v36 = vpop.f32.mrb[21].mxu0  ;;  %v3837_v43 = vld [vmem:[%s4763_s10 + $0x20] sm:$0xff]  }
 0x949   : > { %v1198_v37 = vpop.f32.mrb[22].mxu0  ;;  %v3839_v36 = vld [vmem:[%s4763_s10 + $0x28] sm:$0xff]  }
 0x94a   : > { %v3629_v38 = vpop.f32.mrb[23].mxu0  ;;  %v3840_v37 = vld [vmem:[%s4763_s10 + $0x70] sm:$0xff]  }
 0x94b   : > { %v3841_v38 = vld [vmem:[%s4763_s10 + $0x30] sm:$0xff]  }
 0x9a8   : > { %v1261_v39 = vpop.xlane.xlu1 %1260 }
 0x9a9   : > { %3940 = vrcp.f32 %v1261_v39  ;;  %v3842_v39 = vld [vmem:[%s4763_s10 + $0x78] sm:$0xff]  }
 0x9b3   : > { %v3941_v40 = vpop.eup %3940 }
 0x9b4   : > { %v1263_v41 = vmul.f32 %v3941_v40, %v3939_v32  ;;  %v3834_v32 = vld [vmem:[%s4763_s10 + $0x58] sm:$0xff]  }
 0x9b5   : > { %v3843_v40 = vld [vmem:[%s4763_s10 + $0x38] sm:$0xff]  }
 0x9b6   : > { %v1264_v42 = vpack.c.bf16 %v1263_v41, %v1263_v41  ;;  %v1425_v41 = vlaneseq }
 0x9b8   : > { %3639 = vmatmul.mubr.msk.bf16.vlgmr.msra.gmra.mrb[24].mxu0 %vm748_vm3, %v1264_v42  ;;  %v4395_v42 = vshrl.u32 %v1425_v41, 7  ;;  %v3867_v41 = vld [vmem:[%s4756_s3 + $0x140] ss:$12 sps:$4 sm:$0xff]  }
 0x9b9   : > { %1547 = vmatprep.mubr.bf16.mxu0 %v3981_v25  ;;  %1516 = vmatpush1.bf16.msra.mxu0 %v3804_v60 }
 0x9ba   : > { %1517 = vmatprep.subr.bf16.mxu0 %v3809_v62  ;;  %v1427_v44 = vsub.s32 0, %v4395_v42 }
 0xa8b   : > { %v1307_v45 = vpop.f32.mrb[24].mxu0 }
 0xa8c   : > { %v1313_v47 = vpack.c.bf16 %v1307_v45, %v1307_v45  ;;  %v3640_v48 = vpop.f32.mrb[25].mxu0  ;;  %v1423_v45 = vld [vmem:[%s4762_s9] sm:$0x3] }
 0xa8d   : > { %v1310_v49 = vpop.f32.mrb[26].mxu0  ;;  %v1428_v48 = vrot.slane %v1423_v45, %v1427_v44 }
 0xa8e   : > { %v3641_v50 = vpop.f32.mrb[27].mxu0  ;;  %3647 = vmatmul.mubr.msk.bf16.vlgmr.msra.gmra.mrb[24].mxu1 %vm700_vm2, %v1313_v47  ;;  %v1431_v47 = vsub.s32 1, %v4395_v42 }
 0xa8f   : > { %3470 = vmatpush3.bf16.msra.mxu1 %v3829_v27  ;;  %v3854_v27 = vld [vmem:[%s4756_s3 + $0xf4] ss:$12 sps:$4 sm:$0xff]  }
 0xa90   : > { %3471 = vmatprep.subr.bf16.mxu1 %v3830_v28  ;;  %v1432_v49 = vrot.slane %v1423_v45, %v1431_v47  ;;  %v3852_v28 = vld [vmem:[%s4756_s3 + $0xf0] ss:$12 sps:$4 sm:$0xff]   ;;  %v3870_v45 = vld [vmem:[%s4756_s3 + $0x154] ss:$12 sps:$4 sm:$0xff]  }
 0xa93   : > { %3472 = vmatpush3.bf16.msra.mxu1 %v3831_v29 }
 0xa94   : > { %3473 = vmatprep.subr.bf16.mxu1 %v3832_v30 }
 0xa97   : > { %3474 = vmatpush3.bf16.msra.mxu1 %v3833_v31 }
 0xa98   : > { %3475 = vmatprep.subr.bf16.mxu1 %v3834_v32 }
 0xa9b   : > { %3476 = vmatpush3.bf16.msra.mxu1 %v3835_v33  ;;  %v3855_v33 = vld [vmem:[%s4756_s3 + $0xf8] ss:$12 sps:$4 sm:$0xff]  }
 0xa9c   : > { %3477 = vmatprep.subr.bf16.mxu1 %v3836_v34  ;;  %v3858_v34 = vld [vmem:[%s4756_s3 + $0x10c] ss:$12 sps:$4 sm:$0xff]  }
 0xa9f   : > { %3478 = vmatpush3.bf16.msra.mxu1 %v3837_v43  ;;  %v3856_v43 = vld [vmem:[%s4756_s3 + $0x108] ss:$12 sps:$4 sm:$0xff]  }
 0xb61   : > { %v1363_v51 = vpop.f32.mrb[24].mxu1 }
 0xb62   : > { %v1369_v52 = vadd.f32 %v1363_v51, %v1201_v35  ;;  %v3648_v54 = vpop.f32.mrb[25].mxu1  ;;  %v3838_v35 = vld [vmem:[%s4763_s10 + $0x68] sm:$0xff]  }
 0xb63   : > { %v1366_v55 = vpop.f32.mrb[26].mxu1  ;;  %3479 = vmatprep.subr.bf16.mxu1 %v3838_v35  ;;  %v3859_v35 = vld [vmem:[%s4756_s3 + $0x110] ss:$12 sps:$4 sm:$0xff]  }
 0xb64   : > { %v1370_v57 = vadd.f32 %v1369_v52, %v4067_v0  ;;  %v3649_v58 = vpop.f32.mrb[27].mxu1  ;;  %v3807_v0 = vld [vmem:[%s4761_s8 + $0x10] ss:$8 sps:$4 sm:$0xff]   ;;  %3480 = vmatpush3.bf16.msra.mxu1 %v3839_v36 }
 0xb65   : > { %1518 = vmatpush1.bf16.msra.mxu0 %v3807_v0  ;;  %3481 = vmatprep.subr.bf16.mxu1 %v3840_v37  ;;  %v3862_v36 = vld [vmem:[%s4756_s3 + $0x124] ss:$12 sps:$4 sm:$0xff]   ;;  %v3860_v37 = vld [vmem:[%s4756_s3 + $0x120] ss:$12 sps:$4 sm:$0xff]  }
 0xb66   : > { %v4287_v59 = vadd.f32 %v3209_v56, %v1370_v57  ;;  %1519 = vmatprep.subr.bf16.mxu0 %v3812_v63 }
 0xb68   : > { %1381 = vadd.xlane.f32.xlu1 %v4287_v59  ;;  %3482 = vmatpush3.bf16.msra.mxu1 %v3841_v38  ;;  %v3863_v38 = vld [vmem:[%s4756_s3 + $0x128] ss:$12 sps:$4 sm:$0xff]  }
 0xb69   : > { %1520 = vmatpush1.bf16.msra.mxu0 %v3810_v1  ;;  %3483 = vmatprep.subr.bf16.mxu1 %v3842_v39  ;;  %v3866_v39 = vld [vmem:[%s4756_s3 + $0x13c] ss:$12 sps:$4 sm:$0xff]  }
 0xb6a   : > { %1521 = vmatprep.subr.bf16.mxu0 %v3815_v7 }
 0xb6c   : > { %3484 = vmatpush3.bf16.msra.mxu1 %v3843_v40  ;;  %v3864_v40 = vld [vmem:[%s4756_s3 + $0x138] ss:$12 sps:$4 sm:$0xff]  }
 0xb6d   : > { %1522 = vmatpush1.bf16.msra.mxu0 %v3813_v53  ;;  %3650 = vmatprep.subr.bf16.mxu1 %v3980_v3 }
 0xb6e   : > { %1523 = vmatprep.subr.bf16.mxu0 %v3818_v8 }
 0xb71   : > { %1524 = vmatpush1.bf16.msra.mxu0 %v3816_v9 }
 0xb72   : > { %1525 = vmatprep.subr.bf16.mxu0 %v3821_v10 }
 0xb75   : > { %1526 = vmatpush1.bf16.msra.mxu0 %v3819_v11 }
 0xb76   : > { %1527 = vmatprep.subr.bf16.mxu0 %v3824_v12 }
 0xb79   : > { %1528 = vmatpush1.bf16.msra.mxu0 %v3822_v13 }
 0xb7a   : > { %1529 = vmatprep.subr.bf16.mxu0 %v3827_v46 }
 0xb7d   : > { %1530 = vmatpush1.bf16.msra.mxu0 %v3825_v14 }
 0xbf5   : > { %v1382_v2 = vpop.xlane.xlu1 %1381 }
 0xbf6   : > { %v1383_v4 = vmul.f32 0.0078125, %v1382_v2 }
 0xbf8   : > { %v1384_v5 = vsub.f32 %v4287_v59, %v1383_v4 }
 0xbfa   : > { %v1385_v6 = vmul.f32 %v1384_v5, %v1384_v5 }
 0xbfc   : > { %1386 = vadd.xlane.f32.xlu1 %v1385_v6 }
 0xc89   : > { %v1387_v15 = vpop.xlane.xlu1 %1386 }
 0xc8a   : > { %v1388_v16 = vmul.f32 0.0078125, %v1387_v15 }
 0xc8c   : > { %v1389_v17 = vadd.f32 1e-05, %v1388_v16 }
 0xc8e   : > { %3942 = vrsqrt.f32 %v1389_v17 }
 0xc98   : > { %v3943_v18 = vpop.eup %3942 }
 0xc99   : > { %v1391_v20 = vmul.f32 %v3943_v18, %v1384_v5  ;;  %v3244_v18 = vld [vmem:[%s4764_s11] ss:$0 sm:$0xff] }
 0xc9b   : > { %v1398_v22 = vmul.f32 %v3210_v19, %v1391_v20 }
 0xc9d   : > { %v1405_v23 = vadd.f32 %v3211_v21, %v1398_v22  ;;  %v3844_v21 = vld [vmem:[%s4756_s3 + $0xc0] ss:$12 sps:$4 sm:$0xff]   ;;  %v3846_v22 = vld [vmem:[%s4756_s3 + $0xc4] ss:$12 sps:$4 sm:$0xff]  }
 0xc9e   : > { %1944 = vmatprep.subr.bf16.mxu0 %v3846_v22 }
 0xc9f   : > { %v1406_v24 = vpack.c.bf16 %v1405_v23, %v1405_v23  ;;  %v3847_v23 = vld [vmem:[%s4756_s3 + $0xc8] ss:$12 sps:$4 sm:$0xff]  }
 0xca1   : > { %1548 = vmatmul.mubr.bf16.vlgmr.msra.gmra.mrb[28].mxu0 %v1406_v24  ;;  %v3851_v24 = vld [vmem:[%s4756_s3 + $0xe0] ss:$12 sps:$4 sm:$0xff]  }
 0xca2   : > { %1976 = vmatprep.mubr.bf16.mxu0 %v3981_v25  ;;  %1945 = vmatpush1.bf16.msra.mxu0 %v3844_v21 }
 0xd74   : > { %v1549_v50 = vpop.f32.mrb[28].mxu0 }
 0xd75   : > { %v1550_v51 = vadd.f32 %v1549_v50, %v1428_v48  ;;  %v1551_v52 = vpop.f32.mrb[29].mxu0  ;;  %v3868_v48 = vld [vmem:[%s4756_s3 + $0x150] ss:$12 sps:$4 sm:$0xff]   ;;  %v3874_v50 = vld [vmem:[%s4756_s3 + $0x16c] ss:$12 sps:$4 sm:$0xff]  }
 0xd76   : > { %v1552_v54 = vadd.f32 %v1551_v52, %v1432_v49  ;;  %v1553_v55 = vpop.f32.mrb[30].mxu0  ;;  %v3871_v49 = vld [vmem:[%s4756_s3 + $0x158] ss:$12 sps:$4 sm:$0xff]   ;;  %v3875_v52 = vld [vmem:[%s4756_s3 + $0x170] ss:$12 sps:$4 sm:$0xff]  }
 0xd77   : > { %v1556_v56 = vmul.f32 %v1550_v51, %v1550_v51  ;;  %v1554_v57 = vpop.f32.mrb[31].mxu0 }
 0xd78   : > { %v1557_v58 = vmul.f32 %v1552_v54, %v1552_v54 }
 0xd79   : > { %v1558_v60 = vmul.f32 %v1556_v56, %v1550_v51 }
 0xd7a   : > { %v1559_v61 = vmul.f32 %v1557_v58, %v1552_v54  ;;  %v3247_v58 = vld [vmem:[%s4754_s1 + $0x1] ss:$0 sm:$0xff] }
 0xd7b   : > { %v1560_v62 = vmul.f32 0.044715, %v1558_v60 }
 0xd7c   : > { %v1561_v0 = vmul.f32 0.044715, %v1559_v61  ;;  %v3248_v61 = vld [vmem:[%s4755_s2 + $0x1] ss:$0 sm:$0xff] }
 0xd7d   : > { %v1562_v63 = vadd.f32 %v1560_v62, %v1550_v51 }
 0xd7e   : > { %v1563_v1 = vadd.f32 %v1561_v0, %v1552_v54 }
 0xd7f   : > { %v1564_v2 = vmul.f32 0.7978846, %v1562_v63 }
 0xd80   : > { %v1565_v4 = vmul.f32 0.7978846, %v1563_v1 }
 0xd81   : > { %3944 = vtanh.f32 %v1564_v2 }
 0xd82   : > { %3946 = vtanh.f32 %v1565_v4 }
 0xd8b   : > { %v3945_v5 = vpop.eup %3944 }
 0xd8c   : > { %v3947_v6 = vpop.eup %3946  ;;  %v1568_v7 = vadd.f32 1.0, %v3945_v5 }
 0xd8d   : > { %v1569_v53 = vadd.f32 1.0, %v3947_v6 }
 0xd8e   : > { %v1570_v8 = vmul.f32 0.5, %v1568_v7 }
 0xd8f   : > { %v1571_v9 = vmul.f32 0.5, %v1569_v53 }
 0xd90   : > { %v1572_v10 = vmul.f32 %v1570_v8, %v1550_v51  ;;  %v3872_v51 = vld [vmem:[%s4756_s3 + $0x168] ss:$12 sps:$4 sm:$0xff]  }
 0xd91   : > { %v1573_v11 = vmul.f32 %v1571_v9, %v1552_v54 }
 0xd92   : > { %v1574_v13 = vpack.c.bf16 %v1572_v10, %v1572_v10 }
 0xd93   : > { %v1575_v12 = vpack.c.bf16 %v1573_v11, %v1573_v11 }
 0xd95   : > { %1736 = vmatprep.mubr.bf16.mxu1 %v1575_v12 }
 0xd96   : > { %1737 = vmatmul.mubr.bf16.vlgmr.msra.gmra.mrb[28].mxu1 %v1574_v13 }
 0xd97   : > { %3666 = vmatprep.mubr.msk.bf16.mxu1 %vm3982_vm0, %v3980_v3  ;;  %3651 = vmatpush3.bf16.msra.mxu1 %v3847_v23 }
 0xd98   : > { %3652 = vmatprep.subr.bf16.mxu1 %v3980_v3 }
 0xd9b   : > { %3653 = vmatpush3.bf16.msra.mxu1 %v3851_v24 }
 0xd9c   : > { %3654 = vmatprep.subr.bf16.mxu1 %v3980_v3 }
 0xd9f   : > { %3655 = vmatpush3.bf16.msra.mxu1 %v3855_v33 }
 0xda0   : > { %3656 = vmatprep.subr.bf16.mxu1 %v3980_v3 }
 0xda3   : > { %3657 = vmatpush3.bf16.msra.mxu1 %v3859_v35 }
 0xda4   : > { %3658 = vmatprep.subr.bf16.mxu1 %v3980_v3 }
 0xda7   : > { %3659 = vmatpush3.bf16.msra.mxu1 %v3863_v38 }
 0xda8   : > { %3660 = vmatprep.subr.bf16.mxu1 %v3980_v3 }
 0xdab   : > { %3661 = vmatpush3.bf16.msra.mxu1 %v3867_v41 }
 0xdac   : > { %3662 = vmatprep.subr.bf16.mxu1 %v3980_v3 }
 0xdaf   : > { %3663 = vmatpush3.bf16.msra.mxu1 %v3871_v49 }
 0xdb0   : > { %3664 = vmatprep.subr.bf16.mxu1 %v3980_v3 }
 0xdb3   : > { %3665 = vmatpush3.bf16.msra.mxu1 %v3875_v52 }
 0xdb4   : > { %3676 = vmatprep.subr.bf16.mxu1 %v3980_v3 }
 0xe69   : > { %v3485_v46 = vpop.f32.mrb[28].mxu1 }
 0xe6a   : > { %v3486_v14 = vpop.f32.mrb[29].mxu1 }
 0xe6b   : > { %v3487_v15 = vadd.f32 %v3486_v14, %v3485_v46  ;;  %v3488_v16 = vpop.f32.mrb[30].mxu1 }
 0xe6c   : > { %v3489_v17 = vpop.f32.mrb[31].mxu1 }
 0xe6d   : > { %v1744_v19 = vadd.f32 %v3487_v15, %v4287_v59  ;;  %v3850_v59 = vld [vmem:[%s4756_s3 + $0xdc] ss:$12 sps:$4 sm:$0xff]  }
 0xe6e   : > { %1946 = vmatprep.subr.bf16.mxu0 %v3850_v59 }
 0xe6f   : > { %v4412_v20 = vadd.f32 %v3244_v18, %v1744_v19  ;;  %1947 = vmatpush1.bf16.msra.mxu0 %v3848_v26 }
 0xe70   : > { %1948 = vmatprep.subr.bf16.mxu0 %v3854_v27 }
 0xe71   : > { %1757 = vadd.xlane.f32.xlu0 %v4412_v20 }
 0xe73   : > { %1949 = vmatpush1.bf16.msra.mxu0 %v3852_v28 }
 0xe74   : > { %1950 = vmatprep.subr.bf16.mxu0 %v3858_v34 }
 0xe77   : > { %1951 = vmatpush1.bf16.msra.mxu0 %v3856_v43 }
 0xe78   : > { %1952 = vmatprep.subr.bf16.mxu0 %v3862_v36 }
 0xe7b   : > { %1953 = vmatpush1.bf16.msra.mxu0 %v3860_v37 }
 0xe7c   : > { %1954 = vmatprep.subr.bf16.mxu0 %v3866_v39 }
 0xe7f   : > { %1955 = vmatpush1.bf16.msra.mxu0 %v3864_v40 }
 0xe80   : > { %1956 = vmatprep.subr.bf16.mxu0 %v3870_v45  ;;  %v3878_v45 = vld [vmem:[%s4757_s4 + $0x50] sm:$0xff]  }
 0xe83   : > { %1957 = vmatpush1.bf16.msra.mxu0 %v3868_v48  ;;  %v3879_v48 = vld [vmem:[%s4757_s4 + $0x58] sm:$0xff]  }
 0xe84   : > { %1958 = vmatprep.subr.bf16.mxu0 %v3874_v50 }
 0xe87   : > { %1959 = vmatpush1.bf16.msra.mxu0 %v3872_v51 }
 0xe88   : > { %3670 = vmatprep.subr.bf16.mxu0 %v3980_v3 }
 0xefe   : > { %v1758_v29 = vpop.xlane.xlu0 %1757 }
 0xeff   : > { %v1759_v30 = vmul.f32 0.0078125, %v1758_v29 }
 0xf01   : > { %v1760_v31 = vsub.f32 %v4412_v20, %v1759_v30 }
 0xf03   : > { %v1761_v32 = vmul.f32 %v1760_v31, %v1760_v31 }
 0xf05   : > { %1762 = vadd.xlane.f32.xlu1 %v1761_v32 }
 0xf92   : > { %v1763_v54 = vpop.xlane.xlu1 %1762 }
 0xf93   : > { %v1764_v55 = vmul.f32 0.0078125, %v1763_v54 }
 0xf95   : > { %v1765_v56 = vadd.f32 1e-05, %v1764_v55  ;;  %v3876_v55 = vld [vmem:[%s4757_s4 + $0x40] sm:$0xff]  }
 0xf97   : > { %3948 = vrsqrt.f32 %v1765_v56 }
 0xfa1   : > { %v3949_v57 = vpop.eup %3948 }
 0xfa2   : > { %v1767_v60 = vmul.f32 %v3949_v57, %v1760_v31  ;;  %v3877_v57 = vld [vmem:[%s4757_s4 + $0x48] sm:$0xff]  }
 0xfa4   : > { %v1774_v62 = vmul.f32 %v3247_v58, %v1767_v60 }
 0xfa6   : > { %v1781_v0 = vadd.f32 %v3248_v61, %v1774_v62 }
 0xfa8   : > { %v1782_v63 = vpack.c.bf16 %v1781_v0, %v1781_v0 }
 0xfaa   : > { %1977 = vmatmul.mubr.bf16.vlgmr.msra.gmra.mrb[32].mxu0 %v1782_v63  ;;  %3667 = vmatmul.mubr.bf16.vlgmr.msra.gmra.mrb[32].mxu1 %v1782_v63 }
 0xfab   : > { %3672 = vmatprep.mubr.msk.bf16.mxu0 %vm3982_vm0, %v3980_v3  ;;  %3678 = vmatprep.mubr.msk.bf16.mxu1 %vm3982_vm0, %v3980_v3 }
0x107d   : > { %v1978_v1 = vpop.f32.mrb[32].mxu0  ;;  %v2019_v2 = vpop.f32.mrb[32].mxu1 }
0x107e   : > { %v4507_v4 = vpack.c.bf16 %v2019_v2, %v2019_v2  ;;  %v1980_v5 = vpop.f32.mrb[33].mxu0  ;;  %v3668_v6 = vpop.f32.mrb[33].mxu1  ;;  %v4518_v13 = vpack.c.bf16 %v1978_v1, %v1978_v1 }
0x107f   : > { %v4509_v7 = vpack.c.bf16 %v1980_v5, %v1980_v5  ;;  %v1982_v53 = vpop.f32.mrb[34].mxu0  ;;  %v2022_v8 = vpop.f32.mrb[34].mxu1 }
0x1080   : > { %v1983_v9 = vpop.f32.mrb[35].mxu0  ;;  %v3669_v10 = vpop.f32.mrb[35].mxu1  ;;  %v2108_v11 = vsel %vm764_vm1, %v4507_v4, 0 }
0x1081   : > { %3677 = vmatpush3.bf16.msra.mxu1 %v2108_v11  ;;  %2155 = vrot.lane.b32.xlu1 %v4509_v7, %s3983_s16  ;;  %v2049_v12 = vsel %vm700_vm2, %v4509_v7, 0 }
0x1082   : > { %3671 = vmatpush3.bf16.xpose.msra.mxu0 %v2049_v12  ;;  %3688 = vmatprep.subr.bf16.mxu1 %v3980_v3 }
0x1083   : > { %3682 = vmatprep.subr.bf16.mxu0 %v3980_v3 }
0x1085   : > { %2152 = vrot.lane.b32.xlu1 %v4518_v13, %s3983_s16 }
0x1089   : > { %3673 = vmatmul.mubr.msk.bf16.vlgmr.msra.gmra.mrb[36].mxu0 %vm700_vm2, %v4518_v13 }
0x108a   : > { %3684 = vmatprep.mubr.msk.bf16.mxu0 %vm3982_vm0, %v3980_v3 }
0x10f3   : > { %v2156_v46 = vpop.permute.xlu1 %2155 }
0x10f4   : > { %v2161_v14 = vsel %vm700_vm2, %v2156_v46, 0 }
0x10f5   : > { %3683 = vmatpush3.bf16.xpose.msra.mxu0 %v2161_v14 }
0x10f6   : > { %3694 = vmatprep.subr.bf16.mxu0 %v3980_v3 }
0x10f7   : > { %v2153_v15 = vpop.permute.xlu1 %2152 }
0x10fc   : > { %3685 = vmatmul.mubr.msk.bf16.vlgmr.msra.gmra.mrb[40].mxu0 %vm700_vm2, %v2153_v15 }
0x10fd   : > { %3698 = vmatprep.mubr.msk.bf16.mxu0 %vm3982_vm0, %v3980_v3  ;;  %3695 = vmatpush3.bf16.msra.mxu0 %v3878_v45 }
0x10fe   : > { %3696 = vmatprep.subr.bf16.mxu0 %v3980_v3 }
0x1101   : > { %3697 = vmatpush3.bf16.msra.mxu0 %v3879_v48 }
0x1102   : > { %3710 = vmatprep.subr.bf16.mxu0 %v3980_v3 }
0x115c   : > { %v2085_v16 = vpop.f32.mrb[36].mxu0 }
0x115d   : > { %v2091_v17 = vmul.f32 0.17677669, %v2085_v16  ;;  %v3674_v18 = vpop.f32.mrb[37].mxu0 }
0x115e   : > { %v2088_v19 = vpop.f32.mrb[38].mxu0 }
0x115f   : > { %v3675_v21 = vpop.f32.mrb[39].mxu0  ;;  %v2092_v22 = vsel %vm748_vm3, %v2091_v17, -inf }
0x1160   : > { %2093 = vmax.xlane.f32.xlu1 %v2092_v22 }
0x1171   : > { %2378 = vrot.lane.b32.xlu1 %v4509_v7, %s3984_s17 }
0x11cf   : > { %v2197_v23 = vpop.f32.mrb[40].mxu0 }
0x11d0   : > { %v2203_v59 = vmul.f32 0.17677669, %v2197_v23  ;;  %v3686_v24 = vpop.f32.mrb[41].mxu0 }
0x11d1   : > { %v2200_v26 = vpop.f32.mrb[42].mxu0 }
0x11d2   : > { %v3687_v27 = vpop.f32.mrb[43].mxu0  ;;  %v2204_v28 = vsel %vm748_vm3, %v2203_v59, -inf }
0x11d3   : > { %2205 = vmax.xlane.f32.xlu0 %v2204_v28 }
0x11ed   : > { %v2094_v29 = vpop.xlane.xlu1 %2093 }
0x11ee   : > { %v2095_v30 = vsub.f32 %v2091_v17, %v2094_v29 }
0x11f0   : > { %v2096_v31 = vmul.f32 1.442695, %v2095_v30 }
0x11f1   : > { %v2379_v63 = vpop.permute.xlu1 %2378 }
0x11f2   : > { %3950 = vpow2.f32 %v2096_v31  ;;  %v2384_v53 = vsel %vm700_vm2, %v2379_v63, 0  ;;  %v3882_v63 = vld [vmem:[%s4757_s4 + $0x70] sm:$0xff]  }
0x11fc   : > { %v3951_v32 = vpop.eup %3950 }
0x11fd   : > { %v2098_v33 = vsel %vm748_vm3, %v3951_v32, 0.0 }
0x11fe   : > { %2099 = vadd.xlane.f32.xlu0 %v2098_v33 }
0x1260   : > { %v2206_v34 = vpop.xlane.xlu0 %2205 }
0x1261   : > { %v2207_v43 = vsub.f32 %v2203_v59, %v2206_v34 }
0x1263   : > { %v2208_v35 = vmul.f32 1.442695, %v2207_v43 }
0x1265   : > { %3952 = vpow2.f32 %v2208_v35 }
0x126f   : > { %v3953_v36 = vpop.eup %3952 }
0x1270   : > { %v2210_v37 = vsel %vm748_vm3, %v3953_v36, 0.0 }
0x1271   : > { %2211 = vadd.xlane.f32.xlu0 %v2210_v37 }
0x1287   : > { %2217 = vrot.lane.b32.xlu0 %v4507_v4, %s3983_s16 }
0x128b   : > { %2376 = vrot.lane.b32.xlu0 %v4518_v13, %s3984_s17  ;;  %v2100_v38 = vpop.xlane.xlu0 %2099 }
0x128c   : > { %3954 = vrcp.f32 %v2100_v38  ;;  %v3881_v38 = vld [vmem:[%s4757_s4 + $0x68] sm:$0xff]  }
0x1296   : > { %v3955_v39 = vpop.eup %3954 }
0x1297   : > { %v2102_v40 = vmul.f32 %v3955_v39, %v3951_v32 }
0x1299   : > { %v2103_v41 = vpack.c.bf16 %v2102_v40, %v2102_v40 }
0x129b   : > { %3679 = vmatmul.mubr.msk.bf16.vlgmr.msra.gmra.mrb[36].mxu1 %vm748_vm3, %v2103_v41 }
0x129c   : > { %3690 = vmatprep.mubr.msk.bf16.mxu1 %vm3982_vm0, %v3980_v3 }
0x12fe   : > { %v2212_v49 = vpop.xlane.xlu0 %2211 }
0x12ff   : > { %3956 = vrcp.f32 %v2212_v49 }
0x1302   : > { %v2218_v50 = vpop.permute.xlu0 %2217 }
0x1303   : > { %v2223_v51 = vsel %vm764_vm1, %v2218_v50, 0 }
0x1304   : > { %3689 = vmatpush3.bf16.msra.mxu1 %v2223_v51 }
0x1305   : > { %3702 = vmatprep.subr.bf16.mxu1 %v3980_v3 }
0x1306   : > { %v2377_v9 = vpop.permute.xlu0 %2376 }
0x1309   : > { %v3957_v52 = vpop.eup %3956 }
0x130a   : > { %v2214_v54 = vmul.f32 %v3957_v52, %v3953_v36 }
0x130c   : > { %v2215_v56 = vpack.c.bf16 %v2214_v54, %v2214_v54 }
0x130e   : > { %3691 = vmatmul.mubr.msk.bf16.vlgmr.msra.gmra.mrb[40].mxu1 %vm748_vm3, %v2215_v56 }
0x130f   : > { %3703 = vmatpush3.bf16.msra.mxu1 %v3876_v55  ;;  %3706 = vmatprep.mubr.msk.bf16.mxu1 %vm3982_vm0, %v3980_v3 }
0x1310   : > { %3704 = vmatprep.subr.bf16.mxu1 %v3980_v3 }
0x1313   : > { %3705 = vmatpush3.bf16.msra.mxu1 %v3877_v57 }
0x1314   : > { %3716 = vmatprep.subr.bf16.mxu1 %v3980_v3 }
0x136e   : > { %v2144_v58 = vpop.f32.mrb[36].mxu1 }
0x136f   : > { %v2150_v60 = vpack.c.bf16 %v2144_v58, %v2144_v58  ;;  %v3680_v61 = vpop.f32.mrb[37].mxu1 }
0x1370   : > { %v2147_v62 = vpop.f32.mrb[38].mxu1 }
0x1371   : > { %v3681_v0 = vpop.f32.mrb[39].mxu1  ;;  %3707 = vmatmul.mubr.msk.bf16.vlgmr.msra.gmra.mrb[44].mxu1 %vm700_vm2, %v2150_v60 }
0x1372   : > { %3718 = vmatprep.mubr.msk.bf16.mxu1 %vm3982_vm0, %v3980_v3 }
0x13e1   : > { %v2259_v1 = vpop.f32.mrb[40].mxu1 }
0x13e2   : > { %v2265_v2 = vpack.c.bf16 %v2259_v1, %v2259_v1  ;;  %v3692_v5 = vpop.f32.mrb[41].mxu1 }
0x13e3   : > { %v2262_v6 = vpop.f32.mrb[42].mxu1 }
0x13e4   : > { %v3693_v8 = vpop.f32.mrb[43].mxu1  ;;  %3699 = vmatmul.mubr.msk.bf16.vlgmr.msra.gmra.mrb[44].mxu0 %vm700_vm2, %v2265_v2 }
0x13e5   : > { %3711 = vmatpush3.bf16.xpose.msra.mxu0 %v2384_v53  ;;  %3712 = vmatprep.mubr.msk.bf16.mxu0 %vm3982_vm0, %v3980_v3 }
0x13e6   : > { %3722 = vmatprep.subr.bf16.mxu0 %v3980_v3 }
0x13ec   : > { %3713 = vmatmul.mubr.msk.bf16.vlgmr.msra.gmra.mrb[48].mxu0 %vm700_vm2, %v2377_v9 }
0x13ed   : > { %3726 = vmatprep.mubr.msk.bf16.mxu0 %vm3982_vm0, %v3980_v3 }
0x1444   : > { %v2370_v10 = vpop.f32.mrb[44].mxu1 }
0x1445   : > { %v3708_v11 = vpop.f32.mrb[45].mxu1 }
0x1446   : > { %v2373_v12 = vpop.f32.mrb[46].mxu1  ;;  %v3883_v11 = vld [vmem:[%s4757_s4 + $0x78] sm:$0xff]  }
0x1447   : > { %v3709_v46 = vpop.f32.mrb[47].mxu1 }
0x14b7   : > { %v2315_v14 = vpop.f32.mrb[44].mxu0 }
0x14b8   : > { %v4577_v15 = vadd.f32 %v2370_v10, %v2315_v14  ;;  %v3700_v16 = vpop.f32.mrb[45].mxu0 }
0x14b9   : > { %v2318_v17 = vpop.f32.mrb[46].mxu0 }
0x14ba   : > { %v3701_v18 = vpop.f32.mrb[47].mxu0 }
0x14bf   : > { %v2420_v19 = vpop.f32.mrb[48].mxu0 }
0x14c0   : > { %v2426_v21 = vmul.f32 0.17677669, %v2420_v19  ;;  %v3714_v22 = vpop.f32.mrb[49].mxu0 }
0x14c1   : > { %v2423_v23 = vpop.f32.mrb[50].mxu0 }
0x14c2   : > { %v3715_v59 = vpop.f32.mrb[51].mxu0  ;;  %v2427_v24 = vsel %vm748_vm3, %v2426_v21, -inf }
0x14c3   : > { %2428 = vmax.xlane.f32.xlu0 %v2427_v24  ;;  %v3884_v59 = vld [vmem:[%s4761_s8 + $0x80] ss:$8 sps:$4 sm:$0xff]   ;;  %v3886_v24 = vld [vmem:[%s4761_s8 + $0x84] ss:$8 sps:$4 sm:$0xff]  }
0x14d9   : > { %2439 = vrot.lane.b32.xlu0 %v4507_v4, %s3984_s17 }
0x14dd   : > { %2544 = vrot.lane.b32.xlu0 %v4518_v13, %s3985_s29  ;;  %v3880_v13 = vld [vmem:[%s4757_s4 + $0x60] sm:$0xff]  }
0x14de   : > { %3723 = vmatpush3.bf16.msra.mxu0 %v3880_v13  ;;  %v3895_v13 = vld [vmem:[%s4761_s8 + $0xb4] ss:$8 sps:$4 sm:$0xff]  }
0x14df   : > { %3724 = vmatprep.subr.bf16.mxu0 %v3980_v3 }
0x14e2   : > { %3725 = vmatpush3.bf16.msra.mxu0 %v3881_v38  ;;  %v3907_v38 = vld [vmem:[%s4761_s8 + $0xf4] ss:$8 sps:$4 sm:$0xff]  }
0x14e3   : > { %3736 = vmatprep.subr.bf16.mxu0 %v3980_v3 }
0x1550   : > { %v2429_v26 = vpop.xlane.xlu0 %2428 }
0x1551   : > { %v2430_v27 = vsub.f32 %v2426_v21, %v2429_v26  ;;  %v3889_v26 = vld [vmem:[%s4761_s8 + $0x94] ss:$8 sps:$4 sm:$0xff]  }
0x1553   : > { %v2431_v28 = vmul.f32 1.442695, %v2430_v27  ;;  %v3892_v27 = vld [vmem:[%s4761_s8 + $0xa4] ss:$8 sps:$4 sm:$0xff]  }
0x1554   : > { %v2440_v29 = vpop.permute.xlu0 %2439 }
0x1555   : > { %3958 = vpow2.f32 %v2431_v28  ;;  %v2445_v30 = vsel %vm764_vm1, %v2440_v29, 0  ;;  %v3890_v28 = vld [vmem:[%s4761_s8 + $0xa0] ss:$8 sps:$4 sm:$0xff]  }
0x1556   : > { %3717 = vmatpush3.bf16.msra.mxu1 %v2445_v30 }
0x1557   : > { %3730 = vmatprep.subr.bf16.mxu1 %v3980_v3 }
0x155f   : > { %v3959_v31 = vpop.eup %3958 }
0x1560   : > { %v2433_v32 = vsel %vm748_vm3, %v3959_v31, 0.0 }
0x1561   : > { %2434 = vadd.xlane.f32.xlu1 %v2433_v32 }
0x1572   : > { %2546 = vrot.lane.b32.xlu1 %v4509_v7, %s3985_s29  ;;  %v2545_v7 = vpop.permute.xlu0 %2544 }
0x15ee   : > { %v2435_v33 = vpop.xlane.xlu1 %2434 }
0x15ef   : > { %3960 = vrcp.f32 %v2435_v33  ;;  %v3893_v33 = vld [vmem:[%s4761_s8 + $0xb0] ss:$8 sps:$4 sm:$0xff]  }
0x15f2   : > { %v2547_v35 = vpop.permute.xlu1 %2546 }
0x15f3   : > { %v2552_v37 = vsel %vm700_vm2, %v2547_v35, 0  ;;  %v3901_v35 = vld [vmem:[%s4761_s8 + $0xd4] ss:$8 sps:$4 sm:$0xff]  }
0x15f9   : > { %v3961_v34 = vpop.eup %3960 }
0x15fa   : > { %v2437_v43 = vmul.f32 %v3961_v34, %v3959_v31  ;;  %v3898_v34 = vld [vmem:[%s4761_s8 + $0xc4] ss:$8 sps:$4 sm:$0xff]  }
0x15fc   : > { %v2438_v36 = vpack.c.bf16 %v2437_v43, %v2437_v43  ;;  %v3896_v43 = vld [vmem:[%s4761_s8 + $0xc0] ss:$8 sps:$4 sm:$0xff]  }
0x15fe   : > { %3719 = vmatmul.mubr.msk.bf16.vlgmr.msra.gmra.mrb[48].mxu1 %vm748_vm3, %v2438_v36  ;;  %v3899_v36 = vld [vmem:[%s4761_s8 + $0xd0] ss:$8 sps:$4 sm:$0xff]  }
0x15ff   : > { %3731 = vmatpush3.bf16.xpose.msra.mxu1 %v2552_v37  ;;  %3732 = vmatprep.mubr.msk.bf16.mxu1 %vm3982_vm0, %v3980_v3  ;;  %v3904_v37 = vld [vmem:[%s4761_s8 + $0xe4] ss:$8 sps:$4 sm:$0xff]  }
0x1600   : > { %3742 = vmatprep.subr.bf16.mxu1 %v3980_v3 }
0x1606   : > { %3733 = vmatmul.mubr.msk.bf16.vlgmr.msra.gmra.mrb[52].mxu1 %vm700_vm2, %v2545_v7  ;;  %v3902_v7 = vld [vmem:[%s4761_s8 + $0xe0] ss:$8 sps:$4 sm:$0xff]  }
0x1607   : > { %3746 = vmatprep.mubr.msk.bf16.mxu1 %vm3982_vm0, %v3980_v3  ;;  %3743 = vmatpush3.bf16.msra.mxu1 %v3882_v63  ;;  %v3915_v63 = vld [vmem:[%s4763_s10 + $0x98] sm:$0xff]  }
0x1608   : > { %3744 = vmatprep.subr.bf16.mxu1 %v3980_v3 }
0x160b   : > { %3745 = vmatpush3.bf16.msra.mxu1 %v3883_v11 }
0x16d1   : > { %v2481_v39 = vpop.f32.mrb[48].mxu1 }
0x16d2   : > { %v2487_v40 = vpack.c.bf16 %v2481_v39, %v2481_v39  ;;  %v3720_v41 = vpop.f32.mrb[49].mxu1  ;;  %v3905_v39 = vld [vmem:[%s4761_s8 + $0xf0] ss:$8 sps:$4 sm:$0xff]  }
0x16d3   : > { %v2484_v45 = vpop.f32.mrb[50].mxu1 }
0x16d4   : > { %v3721_v48 = vpop.f32.mrb[51].mxu1  ;;  %3727 = vmatmul.mubr.msk.bf16.vlgmr.msra.gmra.mrb[52].mxu0 %vm700_vm2, %v2487_v40 }
0x16d5   : > { %3738 = vmatprep.mubr.msk.bf16.mxu0 %vm3982_vm0, %v3980_v3 }
0x16d9   : > { %v2588_v49 = vpop.f32.mrb[52].mxu1 }
0x16da   : > { %v2594_v50 = vmul.f32 0.17677669, %v2588_v49  ;;  %v3734_v51 = vpop.f32.mrb[53].mxu1  ;;  %v3345_v49 = vld [vmem:[%s4759_s6 + $0x1] ss:$0 sm:$0xff] }
0x16db   : > { %v2591_v52 = vpop.f32.mrb[54].mxu1  ;;  %v3346_v51 = vld [vmem:[%s4760_s7 + $0x1] ss:$0 sm:$0xff] }
0x16dc   : > { %v3735_v54 = vpop.f32.mrb[55].mxu1  ;;  %v2595_v55 = vsel %vm748_vm3, %v2594_v50, -inf }
0x16dd   : > { %2596 = vmax.xlane.f32.xlu0 %v2595_v55 }
0x16f3   : > { %2607 = vrot.lane.b32.xlu0 %v4507_v4, %s3985_s29 }
0x176a   : > { %v2597_v56 = vpop.xlane.xlu0 %2596 }
0x176b   : > { %v2598_v57 = vsub.f32 %v2594_v50, %v2597_v56  ;;  %v3908_v56 = vld [vmem:[%s4763_s10 + $0xc0] sm:$0xff]  }
0x176c   : > { %3528 = vmatprep.subr.bf16.mxu1 %v3908_v56 }
0x176d   : > { %v2599_v58 = vmul.f32 1.442695, %v2598_v57  ;;  %v3909_v57 = vld [vmem:[%s4763_s10 + $0x80] sm:$0xff]  }
0x176e   : > { %v2608_v60 = vpop.permute.xlu0 %2607 }
0x176f   : > { %3962 = vpow2.f32 %v2599_v58  ;;  %v2613_v61 = vsel %vm764_vm1, %v2608_v60, 0  ;;  %v3910_v58 = vld [vmem:[%s4763_s10 + $0xc8] sm:$0xff]  }
0x1770   : > { %3737 = vmatpush3.bf16.msra.mxu0 %v2613_v61  ;;  %v3911_v60 = vld [vmem:[%s4763_s10 + $0x88] sm:$0xff]   ;;  %v3912_v61 = vld [vmem:[%s4763_s10 + $0xd0] sm:$0xff]  }
0x1771   : > { %2862 = vmatprep.subr.bf16.mxu0 %v3886_v24 }
0x1779   : > { %v3963_v62 = vpop.eup %3962 }
0x177a   : > { %v2601_v0 = vsel %vm748_vm3, %v3963_v62, 0.0 }
0x177b   : > { %2602 = vadd.xlane.f32.xlu1 %v2601_v0  ;;  %v3914_v0 = vld [vmem:[%s4763_s10 + $0xd8] sm:$0xff]  }
0x17a7   : > { %v2537_v4 = vpop.f32.mrb[52].mxu0 }
0x17a8   : > { %v2543_v1 = vadd.f32 %v2537_v4, %v4577_v15  ;;  %v3728_v2 = vpop.f32.mrb[53].mxu0  ;;  %v3916_v4 = vld [vmem:[%s4763_s10 + $0xe0] sm:$0xff]  }
0x17a9   : > { %v2540_v5 = vpop.f32.mrb[54].mxu0  ;;  %v3918_v2 = vld [vmem:[%s4763_s10 + $0xe8] sm:$0xff]  }
0x17aa   : > { %v3729_v6 = vpop.f32.mrb[55].mxu0  ;;  %v3919_v5 = vld [vmem:[%s4763_s10 + $0xa8] sm:$0xff]  }
0x17ab   : > { %v3920_v6 = vld [vmem:[%s4763_s10 + $0xf0] sm:$0xff]  }
0x1808   : > { %v2603_v53 = vpop.xlane.xlu1 %2602 }
0x1809   : > { %3964 = vrcp.f32 %v2603_v53  ;;  %v3921_v53 = vld [vmem:[%s4763_s10 + $0xb0] sm:$0xff]  }
0x1813   : > { %v3965_v8 = vpop.eup %3964 }
0x1814   : > { %v2605_v9 = vmul.f32 %v3965_v8, %v3963_v62  ;;  %v3913_v62 = vld [vmem:[%s4763_s10 + $0x90] sm:$0xff]   ;;  %v3922_v8 = vld [vmem:[%s4763_s10 + $0xf8] sm:$0xff]  }
0x1816   : > { %v2606_v10 = vpack.c.bf16 %v2605_v9, %v2605_v9  ;;  %v3923_v9 = vld [vmem:[%s4763_s10 + $0xb8] sm:$0xff]  }
0x1818   : > { %3739 = vmatmul.mubr.msk.bf16.vlgmr.msra.gmra.mrb[56].mxu0 %vm748_vm3, %v2606_v10  ;;  %v3363_v10 = vld [vmem:[%s4762_s9 + $0x2] sm:$0x3] }
0x1819   : > { %2894 = vmatprep.mubr.bf16.mxu0 %v3981_v25  ;;  %v3342_v25 = vld [vmem:[%s4758_s5 + $0x1] ss:$0 sm:$0xff]  ;;  %2863 = vmatpush1.bf16.msra.mxu0 %v3884_v59  ;;  %v2775_v11 = vrot.slane %v3363_v10, %v1427_v44 }
0x181a   : > { %2864 = vmatprep.subr.bf16.mxu0 %v3889_v26 }
0x18eb   : > { %v2649_v3 = vpop.f32.mrb[56].mxu0 }
0x18ec   : > { %v2655_v12 = vpack.c.bf16 %v2649_v3, %v2649_v3  ;;  %v3740_v46 = vpop.f32.mrb[57].mxu0  ;;  %v2779_v3 = vrot.slane %v3363_v10, %v1431_v47 }
0x18ed   : > { %v2652_v14 = vpop.f32.mrb[58].mxu0 }
0x18ee   : > { %v3741_v15 = vpop.f32.mrb[59].mxu0  ;;  %3747 = vmatmul.mubr.msk.bf16.vlgmr.msra.gmra.mrb[56].mxu1 %vm700_vm2, %v2655_v12 }
0x18ef   : > { %3529 = vmatpush3.bf16.msra.mxu1 %v3909_v57 }
0x18f0   : > { %3530 = vmatprep.subr.bf16.mxu1 %v3910_v58 }
0x18f3   : > { %3531 = vmatpush3.bf16.msra.mxu1 %v3911_v60 }
0x18f4   : > { %3532 = vmatprep.subr.bf16.mxu1 %v3912_v61 }
0x18f7   : > { %3533 = vmatpush3.bf16.msra.mxu1 %v3913_v62 }
0x18f8   : > { %3534 = vmatprep.subr.bf16.mxu1 %v3914_v0 }
0x18fb   : > { %3535 = vmatpush3.bf16.msra.mxu1 %v3915_v63 }
0x18fc   : > { %3536 = vmatprep.subr.bf16.mxu1 %v3916_v4 }
0x19c1   : > { %v2705_v16 = vpop.f32.mrb[56].mxu1 }
0x19c2   : > { %v2711_v17 = vadd.f32 %v2705_v16, %v2543_v1  ;;  %v3748_v18 = vpop.f32.mrb[57].mxu1  ;;  %v3917_v1 = vld [vmem:[%s4763_s10 + $0xa0] sm:$0xff]  }
0x19c3   : > { %v2708_v19 = vpop.f32.mrb[58].mxu1  ;;  %3537 = vmatpush3.bf16.msra.mxu1 %v3917_v1 }
0x19c4   : > { %v2712_v21 = vadd.f32 %v2711_v17, %v4412_v20  ;;  %v3749_v22 = vpop.f32.mrb[59].mxu1  ;;  %v3887_v20 = vld [vmem:[%s4761_s8 + $0x90] ss:$8 sps:$4 sm:$0xff]   ;;  %3538 = vmatprep.subr.bf16.mxu1 %v3918_v2 }
0x19c5   : > { %2865 = vmatpush1.bf16.msra.mxu0 %v3887_v20 }
0x19c6   : > { %v4628_v23 = vadd.f32 %v3342_v25, %v2712_v21  ;;  %2866 = vmatprep.subr.bf16.mxu0 %v3892_v27 }
0x19c7   : > { %3539 = vmatpush3.bf16.msra.mxu1 %v3919_v5 }
0x19c8   : > { %2726 = vadd.xlane.f32.xlu1 %v4628_v23  ;;  %3540 = vmatprep.subr.bf16.mxu1 %v3920_v6 }
0x19c9   : > { %2867 = vmatpush1.bf16.msra.mxu0 %v3890_v28 }
0x19ca   : > { %2868 = vmatprep.subr.bf16.mxu0 %v3895_v13 }
0x19cb   : > { %3541 = vmatpush3.bf16.msra.mxu1 %v3921_v53 }
0x19cc   : > { %3542 = vmatprep.subr.bf16.mxu1 %v3922_v8 }
0x19cd   : > { %2869 = vmatpush1.bf16.msra.mxu0 %v3893_v33 }
0x19ce   : > { %2870 = vmatprep.subr.bf16.mxu0 %v3898_v34 }
0x19cf   : > { %3543 = vmatpush3.bf16.msra.mxu1 %v3923_v9 }
0x19d1   : > { %2871 = vmatpush1.bf16.msra.mxu0 %v3896_v43 }
0x19d2   : > { %2872 = vmatprep.subr.bf16.mxu0 %v3901_v35 }
0x19d5   : > { %2873 = vmatpush1.bf16.msra.mxu0 %v3899_v36 }
0x19d6   : > { %2874 = vmatprep.subr.bf16.mxu0 %v3904_v37  ;;  %v3429_v37 = vld [vmem:[%s4764_s11 + $0x1] ss:$0 sm:$0xff] }
0x19d9   : > { %2875 = vmatpush1.bf16.msra.mxu0 %v3902_v7 }
0x19da   : > { %2876 = vmatprep.subr.bf16.mxu0 %v3907_v38 }
0x19dd   : > { %2877 = vmatpush1.bf16.msra.mxu0 %v3905_v39 }
0x1a55   : > { %v2727_v29 = vpop.xlane.xlu1 %2726 }
0x1a56   : > { %v2728_v30 = vmul.f32 0.0078125, %v2727_v29 }
0x1a58   : > { %v2729_v31 = vsub.f32 %v4628_v23, %v2728_v30 }
0x1a5a   : > { %v2730_v32 = vmul.f32 %v2729_v31, %v2729_v31 }
0x1a5c   : > { %2731 = vadd.xlane.f32.xlu1 %v2730_v32 }
0x1ae9   : > { %v2732_v40 = vpop.xlane.xlu1 %2731 }
0x1aea   : > { %v2733_v41 = vmul.f32 0.0078125, %v2732_v40 }
0x1aec   : > { %v2734_v45 = vadd.f32 1e-05, %v2733_v41 }
0x1aee   : > { %3966 = vrsqrt.f32 %v2734_v45 }
0x1af8   : > { %v3967_v48 = vpop.eup %3966 }
0x1af9   : > { %v2736_v50 = vmul.f32 %v3967_v48, %v2729_v31 }
0x1afb   : > { %v2743_v52 = vmul.f32 %v3345_v49, %v2736_v50 }
0x1afd   : > { %v2750_v54 = vadd.f32 %v3346_v51, %v2743_v52 }
0x1aff   : > { %v2751_v55 = vpack.c.bf16 %v2750_v54, %v2750_v54 }
0x1b01   : > { %2895 = vmatmul.mubr.bf16.vlgmr.msra.gmra.mrb[60].mxu0 %v2751_v55 }
0x1bd4   : > { %v2896_v12 = vpop.f32.mrb[60].mxu0 }
0x1bd5   : > { %v2897_v46 = vadd.f32 %v2896_v12, %v2775_v11  ;;  %v2898_v14 = vpop.f32.mrb[61].mxu0 }
0x1bd6   : > { %v2899_v15 = vadd.f32 %v2898_v14, %v2779_v3  ;;  %v2900_v16 = vpop.f32.mrb[62].mxu0 }
0x1bd7   : > { %v2903_v17 = vmul.f32 %v2897_v46, %v2897_v46  ;;  %v2901_v18 = vpop.f32.mrb[63].mxu0 }
0x1bd8   : > { %v2904_v19 = vmul.f32 %v2899_v15, %v2899_v15 }
0x1bd9   : > { %v2905_v25 = vmul.f32 %v2903_v17, %v2897_v46 }
0x1bda   : > { %v2906_v21 = vmul.f32 %v2904_v19, %v2899_v15 }
0x1bdb   : > { %v2907_v22 = vmul.f32 0.044715, %v2905_v25 }
0x1bdc   : > { %v2908_v59 = vmul.f32 0.044715, %v2906_v21 }
0x1bdd   : > { %v2909_v24 = vadd.f32 %v2907_v22, %v2897_v46 }
0x1bde   : > { %v2910_v26 = vadd.f32 %v2908_v59, %v2899_v15 }
0x1bdf   : > { %v2911_v20 = vmul.f32 0.7978846, %v2909_v24 }
0x1be0   : > { %v2912_v27 = vmul.f32 0.7978846, %v2910_v26 }
0x1be1   : > { %3968 = vtanh.f32 %v2911_v20 }
0x1be2   : > { %3970 = vtanh.f32 %v2912_v27 }
0x1beb   : > { %v3969_v42 = vpop.eup %3968 }
0x1bec   : > { %v3971_v44 = vpop.eup %3970  ;;  %v2915_v47 = vadd.f32 1.0, %v3969_v42 }
0x1bed   : > { %v2916_v28 = vadd.f32 1.0, %v3971_v44 }
0x1bee   : > { %v2917_v29 = vmul.f32 0.5, %v2915_v47 }
0x1bef   : > { %v2918_v30 = vmul.f32 0.5, %v2916_v28 }
0x1bf0   : > { %v2919_v31 = vmul.f32 %v2917_v29, %v2897_v46 }
0x1bf1   : > { %v2920_v32 = vmul.f32 %v2918_v30, %v2899_v15 }
0x1bf2   : > { %v2921_v33 = vpack.c.bf16 %v2919_v31, %v2919_v31 }
0x1bf3   : > { %v2922_v13 = vpack.c.bf16 %v2920_v32, %v2920_v32 }
0x1bf5   : > { %3084 = vmatprep.mubr.bf16.mxu1 %v2922_v13 }
0x1bf6   : > { %3085 = vmatmul.mubr.bf16.vlgmr.msra.gmra.mrb[60].mxu1 %v2921_v33 }
0x1cc9   : > { %v3544_v34 = vpop.f32.mrb[60].mxu1 }
0x1cca   : > { %v3545_v43 = vpop.f32.mrb[61].mxu1 }
0x1ccb   : > { %v3546_v35 = vadd.f32 %v3545_v43, %v3544_v34  ;;  %v3547_v36 = vpop.f32.mrb[62].mxu1 }
0x1ccc   : > { %v3548_v7 = vpop.f32.mrb[63].mxu1 }
0x1ccd   : > { %v3092_v38 = vadd.f32 %v3546_v35, %v4628_v23 }
0x1ccf   : > { %v3101_v39 = vadd.f32 %v3429_v37, %v3092_v38 }
0x1cd1   : > { %3102 = vst [vmem:[%s408_s18] sm:$0xff] %v3101_v39 }
0x1cd2 PF: > { %s22_s21 = sadd.s32 1, %s3978_s21  }
0x1cd3   : > { %p19_p4 = scmp.ge.s32.totalorder %s22_s21, 4  }
0x1cd5   :  { %21 = sbr.rel (!%p19_p4) target bundleno = 1 (0x1), region = 109 }

</bundles_post_ra>
